<compile_context>
chip_gen: v7x
topology: tpu7x:2x2x1
jax: 0.10.0
libtpu: 0.0.40
codegen_flags: <defaults>
</compile_context>

<pallas_src>
import jax
import jax.numpy as jnp
from jax.experimental import pallas as pl
from jax.experimental.pallas import tpu as pltpu


def llama_mlp_kernel(x_ref, w1_ref, b1_ref, w2_ref, b2_ref, wp_ref, bp_ref,
                     o_ref, acc_ref):
    j = pl.program_id(1)

    @pl.when(j == 0)
    def _():
        acc_ref[...] = jnp.zeros_like(acc_ref)

    x = x_ref[...]                                                   # (tm, E)
    # fc_1 / fc_2 for this I-chunk: two MXU passes sharing the x tile,
    # f32 accumulate, bias add in f32.
    h1 = jnp.dot(x, w1_ref[...], preferred_element_type=jnp.float32) + b1_ref[...]
    h2 = jnp.dot(x, w2_ref[...], preferred_element_type=jnp.float32) + b2_ref[...]
    # SwiGLU gate in f32 (sigmoid -> EUP, mul -> VPU).
    h = (h1 * jax.nn.sigmoid(h1)) * h2                               # (tm, tn)
    # Partial projection for this I-chunk, accumulated in f32 VMEM scratch.
    acc_ref[...] += jnp.dot(h.astype(wp_ref.dtype), wp_ref[...],
                            preferred_element_type=jnp.float32)

    @pl.when(j == pl.num_programs(1) - 1)
    def _():
        # Projection bias added once per output tile (epilogue).
        o_ref[...] = (acc_ref[...] + bp_ref[...]).astype(o_ref.dtype)


def prepare_llama_mlp_weights(w1, b1, w2, b2, wp, bp, *, tn=512,
                              compute_dtype=jnp.bfloat16):
    """One-time weight prep (hoist out of the per-step path).

    Weights are stored transposed, (in, out).  Pads the intermediate dim I up
    to a multiple of tn with zeros (padded chunks contribute exactly zero) and
    casts the matmul operands to `compute_dtype` (None -> keep f32).
    Biases stay f32 and are reshaped to (1, dim).
    """
    E, I = w1.shape
    b1 = b1.reshape(1, -1)
    b2 = b2.reshape(1, -1)
    bp = bp.reshape(1, -1)

    Ip = pl.cdiv(I, tn) * tn
    if Ip != I:
        pad = Ip - I
        w1 = jnp.pad(w1, ((0, 0), (0, pad)))
        w2 = jnp.pad(w2, ((0, 0), (0, pad)))
        b1 = jnp.pad(b1, ((0, 0), (0, pad)))
        b2 = jnp.pad(b2, ((0, 0), (0, pad)))
        wp = jnp.pad(wp, ((0, pad), (0, 0)))

    if compute_dtype is not None:
        w1 = w1.astype(compute_dtype)
        w2 = w2.astype(compute_dtype)
        wp = wp.astype(compute_dtype)

    return (w1, b1.astype(jnp.float32), w2, b2.astype(jnp.float32),
            wp, bp.astype(jnp.float32))


def _vmem_limit_bytes(tm, tn, E, x_bytes, w_bytes, out_bytes):
    need = (
        2 * tm * E * x_bytes            # x tile (double-buffered)
        + 2 * 2 * E * tn * w_bytes      # w1 + w2 chunks
        + 2 * tn * E * w_bytes          # wp chunk
        + 2 * tm * E * out_bytes        # output tile
        + tm * E * 4                    # f32 accumulator scratch
        + 2 * (2 * tn + E) * 4          # biases
    )
    need = int(need * 1.3) + (4 << 20)  # headroom for Mosaic internal scratch
    return max(32 << 20, min(need, 100 << 20))


def llama_mlp(x, prepared_weights, *, tm=512, tn=512):
    """x: (B, T, E) f32/bf16.  prepared_weights: output of prepare_llama_mlp_weights
    (must have been prepared with the same tn).  Returns (B, T, E) in x.dtype."""
    w1, b1, w2, b2, wp, bp = prepared_weights
    B, T, E = x.shape
    Ip = w1.shape[1]
    assert Ip % tn == 0, "weights must be prepared with the same tn (padded I)"
    assert tn % 128 == 0 and E % 128 == 0, "lane dims must be multiples of 128"

    M = B * T
    out_dtype = x.dtype
    x2d = x.reshape(M, E).astype(w1.dtype)     # match MXU operand dtype

    # Clamp tm for small M (decode) so we don't pad / compute dead rows.
    tm = max(8, min(tm, pl.cdiv(M, 8) * 8))
    Mp = pl.cdiv(M, tm) * tm
    if Mp != M:
        x2d = jnp.pad(x2d, ((0, Mp - M), (0, 0)))

    vmem_limit = _vmem_limit_bytes(tm, tn, E, x2d.dtype.itemsize,
                                   w1.dtype.itemsize,
                                   jnp.dtype(out_dtype).itemsize)

    out = pl.pallas_call(
        llama_mlp_kernel,
        out_shape=jax.ShapeDtypeStruct((Mp, E), out_dtype),
        grid_spec=pltpu.PrefetchScalarGridSpec(
            num_scalar_prefetch=0,
            grid=(Mp // tm, Ip // tn),
            in_specs=[
                pl.BlockSpec((tm, E), lambda i, j: (i, 0)),   # x tile (resident over j)
                pl.BlockSpec((E, tn), lambda i, j: (0, j)),   # W1 chunk
                pl.BlockSpec((1, tn), lambda i, j: (0, j)),   # b1 chunk
                pl.BlockSpec((E, tn), lambda i, j: (0, j)),   # W2 chunk
                pl.BlockSpec((1, tn), lambda i, j: (0, j)),   # b2 chunk
                pl.BlockSpec((tn, E), lambda i, j: (j, 0)),   # Wp chunk
                pl.BlockSpec((1, E), lambda i, j: (0, 0)),    # bp
            ],
            out_specs=pl.BlockSpec((tm, E), lambda i, j: (i, 0)),
            scratch_shapes=[pltpu.VMEM((tm, E), jnp.float32)],
        ),
        compiler_params=pltpu.CompilerParams(
            dimension_semantics=("parallel", "arbitrary"),
            vmem_limit_bytes=vmem_limit,
        ),
    )(x2d, w1, b1, w2, b2, wp, bp)
    return out[:M].reshape(B, T, E)


def reference_mlp(x, w1, b1, w2, b2, wp, bp):
    h1 = x @ w1 + b1
    h2 = x @ w2 + b2
    h = jax.nn.silu(h1) * h2
    return h @ wp + bp


if __name__ == "__main__":
    # Small, lane-friendly config: n_embd=128, intermediate_size=512, bias=True.
    B, T, E, I = 2, 64, 128, 512
    key = jax.random.PRNGKey(0)
    kx, k1, kb1, k2, kb2, kp, kbp = jax.random.split(key, 7)

    x = jax.random.normal(kx, (B, T, E), dtype=jnp.float32)
    # nn.Linear weight is (out, in); stored transposed (in, out) for the kernel.
    w1 = jax.random.normal(k1, (E, I), dtype=jnp.float32) * 0.02
    b1 = jax.random.normal(kb1, (I,), dtype=jnp.float32) * 0.02
    w2 = jax.random.normal(k2, (E, I), dtype=jnp.float32) * 0.02
    b2 = jax.random.normal(kb2, (I,), dtype=jnp.float32) * 0.02
    wp = jax.random.normal(kp, (I, E), dtype=jnp.float32) * 0.02
    bp = jax.random.normal(kbp, (E,), dtype=jnp.float32) * 0.02

    y_ref = reference_mlp(x, w1, b1, w2, b2, wp, bp)

    # f32 debug path: tn=256 -> 2 I-chunks; tm clamps from 512 down to M=128.
    prep_f32 = prepare_llama_mlp_weights(w1, b1, w2, b2, wp, bp,
                                         tn=256, compute_dtype=None)
    y = jax.block_until_ready(llama_mlp(x, prep_f32, tm=512, tn=256))
    assert y.shape == (B, T, E)
    assert jnp.allclose(y, y_ref, atol=1e-4, rtol=1e-4), "f32 mismatch vs reference"

    # Default bf16 compute path (f32 gate + accumulation), tn=512 -> 1 chunk.
    prep_bf16 = prepare_llama_mlp_weights(w1, b1, w2, b2, wp, bp, tn=512)
    y_bf16 = jax.block_until_ready(llama_mlp(x, prep_bf16, tn=512))
    assert y_bf16.shape == (B, T, E)
    assert jnp.allclose(y_bf16, y_ref, atol=2e-2, rtol=2e-2), "bf16 mismatch vs reference"

    # Ragged intermediate size (I=320 not a multiple of tn=256): the zero-padded
    # last I-chunk must contribute exactly zero -> tight f32 check.
    Ir = 320
    w1r = jax.random.normal(k1, (E, Ir), dtype=jnp.float32) * 0.02
    b1r = jax.random.normal(kb1, (Ir,), dtype=jnp.float32) * 0.02
    w2r = jax.random.normal(k2, (E, Ir), dtype=jnp.float32) * 0.02
    b2r = jax.random.normal(kb2, (Ir,), dtype=jnp.float32) * 0.02
    wpr = jax.random.normal(kp, (Ir, E), dtype=jnp.float32) * 0.02
    y_ref_r = reference_mlp(x, w1r, b1r, w2r, b2r, wpr, bp)
    prep_r = prepare_llama_mlp_weights(w1r, b1r, w2r, b2r, wpr, bp,
                                       tn=256, compute_dtype=None)
    y_r = jax.block_until_ready(llama_mlp(x, prep_r, tn=256))
    assert jnp.allclose(y_r, y_ref_r, atol=1e-4, rtol=1e-4), "ragged-I mismatch"

    print("KERNEL_OK")
</pallas_src>

<mosaic_0001>
module attributes {stable_mosaic.version = 11 : i64} {
  func.func @llama_mlp_kernel(%arg0: i32, %arg1: i32, %arg2: memref<128x128xf32, #tpu.memory_space<vmem>>, %arg3: memref<128x256xf32, #tpu.memory_space<vmem>>, %arg4: memref<1x256xf32, #tpu.memory_space<vmem>>, %arg5: memref<128x256xf32, #tpu.memory_space<vmem>>, %arg6: memref<1x256xf32, #tpu.memory_space<vmem>>, %arg7: memref<256x128xf32, #tpu.memory_space<vmem>>, %arg8: memref<1x128xf32, #tpu.memory_space<vmem>>, %arg9: memref<128x128xf32, #tpu.memory_space<vmem>>, %arg10: memref<128x128xf32, #tpu.memory_space<vmem>>) attributes {dimension_semantics = [#tpu.dimension_semantics<parallel>, #tpu.dimension_semantics<arbitrary>], iteration_bounds = array<i64: 1, 2>, scalar_prefetch = 0 : i64, scratch_operands = 1 : i64, tpu.core_type = #tpu.core_type<tc>, window_params = [{transform_indices = @transform_0, window_bounds = array<i64: 128, 128>}, {transform_indices = @transform_1, window_bounds = array<i64: 128, 256>}, {transform_indices = @transform_2, window_bounds = array<i64: 1, 256>}, {transform_indices = @transform_3, window_bounds = array<i64: 128, 256>}, {transform_indices = @transform_4, window_bounds = array<i64: 1, 256>}, {transform_indices = @transform_5, window_bounds = array<i64: 256, 128>}, {pipeline_mode = #tpu.pipeline_mode<synchronous>, transform_indices = @transform_6, window_bounds = array<i64: 1, 128>}, {transform_indices = @transform_7, window_bounds = array<i64: 128, 128>}]} {
    %c0_i32 = arith.constant 0 : i32
    %0 = arith.cmpi eq, %arg1, %c0_i32 : i32
    %1 = arith.extui %0 : i1 to i32
    %c0_i32_0 = arith.constant 0 : i32
    %2 = arith.cmpi ne, %1, %c0_i32_0 : i32
    scf.if %2 {
      %cst_20 = arith.constant 0.000000e+00 : f32
      %29 = vector.broadcast %cst_20 : f32 to vector<128x128xf32>
      %c0_21 = arith.constant 0 : index
      %c0_22 = arith.constant 0 : index
      %30 = vector.load %arg10[%c0_21, %c0_22] : memref<128x128xf32, #tpu.memory_space<vmem>>, vector<128x128xf32>
      tpu.vector_store %arg10[%c0_21, %c0_22], %29 {strides = array<i32>} : memref<128x128xf32, #tpu.memory_space<vmem>>, vector<128x128xf32>,
    } else {
    }
    %c0 = arith.constant 0 : index
    %c0_1 = arith.constant 0 : index
    %3 = vector.load %arg2[%c0, %c0_1] : memref<128x128xf32, #tpu.memory_space<vmem>>, vector<128x128xf32>
    %c0_2 = arith.constant 0 : index
    %c0_3 = arith.constant 0 : index
    %4 = vector.load %arg3[%c0_2, %c0_3] : memref<128x256xf32, #tpu.memory_space<vmem>>, vector<128x256xf32>
    %cst = arith.constant dense<0.000000e+00> : vector<128x256xf32>
    %5 = tpu.matmul %3, %4, %cst {dimension_numbers = #tpu.dot_dimension_numbers<[1], [0], [0], [1], [0, 0, 1, 1], [], []>} : vector<128x128xf32>, vector<128x256xf32>, vector<128x256xf32> -> vector<128x256xf32>
    %c0_4 = arith.constant 0 : index
    %c0_5 = arith.constant 0 : index
    %6 = vector.load %arg4[%c0_4, %c0_5] : memref<1x256xf32, #tpu.memory_space<vmem>>, vector<1x256xf32>
    %7 = vector.broadcast %6 : vector<1x256xf32> to vector<128x256xf32>
    %8 = arith.addf %5, %7 : vector<128x256xf32>
    %c0_6 = arith.constant 0 : index
    %c0_7 = arith.constant 0 : index
    %9 = vector.load %arg5[%c0_6, %c0_7] : memref<128x256xf32, #tpu.memory_space<vmem>>, vector<128x256xf32>
    %cst_8 = arith.constant dense<0.000000e+00> : vector<128x256xf32>
    %10 = tpu.matmul %3, %9, %cst_8 {dimension_numbers = #tpu.dot_dimension_numbers<[1], [0], [0], [1], [0, 0, 1, 1], [], []>} : vector<128x128xf32>, vector<128x256xf32>, vector<128x256xf32> -> vector<128x256xf32>
    %c0_9 = arith.constant 0 : index
    %c0_10 = arith.constant 0 : index
    %11 = vector.load %arg6[%c0_9, %c0_10] : memref<1x256xf32, #tpu.memory_space<vmem>>, vector<1x256xf32>
    %12 = vector.broadcast %11 : vector<1x256xf32> to vector<128x256xf32>
    %13 = arith.addf %10, %12 : vector<128x256xf32>
    %14 = arith.negf %8 : vector<128x256xf32>
    %15 = math.exp %14 : vector<128x256xf32>
    %cst_11 = arith.constant 1.000000e+00 : f32
    %16 = vector.broadcast %cst_11 : f32 to vector<128x256xf32>
    %17 = arith.addf %16, %15 : vector<128x256xf32>
    %18 = arith.divf %16, %17 : vector<128x256xf32>
    %19 = arith.mulf %8, %18 : vector<128x256xf32>
    %20 = arith.mulf %19, %13 : vector<128x256xf32>
    %c0_12 = arith.constant 0 : index
    %c0_13 = arith.constant 0 : index
    %21 = vector.load %arg10[%c0_12, %c0_13] : memref<128x128xf32, #tpu.memory_space<vmem>>, vector<128x128xf32>
    %c0_14 = arith.constant 0 : index
    %c0_15 = arith.constant 0 : index
    %22 = vector.load %arg7[%c0_14, %c0_15] : memref<256x128xf32, #tpu.memory_space<vmem>>, vector<256x128xf32>
    %cst_16 = arith.constant dense<0.000000e+00> : vector<128x128xf32>
    %23 = tpu.matmul %20, %22, %cst_16 {dimension_numbers = #tpu.dot_dimension_numbers<[1], [0], [0], [1], [0, 0, 1, 1], [], []>} : vector<128x256xf32>, vector<256x128xf32>, vector<128x128xf32> -> vector<128x128xf32>
    %24 = arith.addf %21, %23 : vector<128x128xf32>
    %c0_17 = arith.constant 0 : index
    %c0_18 = arith.constant 0 : index
    %25 = vector.load %arg10[%c0_17, %c0_18] : memref<128x128xf32, #tpu.memory_space<vmem>>, vector<128x128xf32>
    tpu.vector_store %arg10[%c0_17, %c0_18], %24 {strides = array<i32>} : memref<128x128xf32, #tpu.memory_space<vmem>>, vector<128x128xf32>,
    %c1_i32 = arith.constant 1 : i32
    %26 = arith.cmpi eq, %arg1, %c1_i32 : i32
    %27 = arith.extui %26 : i1 to i32
    %c0_i32_19 = arith.constant 0 : i32
    %28 = arith.cmpi ne, %27, %c0_i32_19 : i32
    scf.if %28 {
      %c0_20 = arith.constant 0 : index
      %c0_21 = arith.constant 0 : index
      %29 = vector.load %arg10[%c0_20, %c0_21] : memref<128x128xf32, #tpu.memory_space<vmem>>, vector<128x128xf32>
      %c0_22 = arith.constant 0 : index
      %c0_23 = arith.constant 0 : index
      %30 = vector.load %arg8[%c0_22, %c0_23] : memref<1x128xf32, #tpu.memory_space<vmem>>, vector<1x128xf32>
      %31 = vector.broadcast %30 : vector<1x128xf32> to vector<128x128xf32>
      %32 = arith.addf %29, %31 : vector<128x128xf32>
      %c0_24 = arith.constant 0 : index
      %c0_25 = arith.constant 0 : index
      %33 = vector.load %arg9[%c0_24, %c0_25] : memref<128x128xf32, #tpu.memory_space<vmem>>, vector<128x128xf32>
      tpu.vector_store %arg9[%c0_24, %c0_25], %32 {strides = array<i32>} : memref<128x128xf32, #tpu.memory_space<vmem>>, vector<128x128xf32>,
    } else {
    }
    return
  }
  func.func @transform_0(%arg0: i32, %arg1: i32) -> (i32, i32) {
    %c0_i32 = arith.constant 0 : i32
    %c0_i32_0 = arith.constant 0 : i32
    return %arg0, %c0_i32 : i32, i32
  }
  func.func @transform_1(%arg0: i32, %arg1: i32) -> (i32, i32) {
    %c0_i32 = arith.constant 0 : i32
    %c0_i32_0 = arith.constant 0 : i32
    return %c0_i32, %arg1 : i32, i32
  }
  func.func @transform_2(%arg0: i32, %arg1: i32) -> (i32, i32) {
    %c0_i32 = arith.constant 0 : i32
    %c0_i32_0 = arith.constant 0 : i32
    return %c0_i32, %arg1 : i32, i32
  }
  func.func @transform_3(%arg0: i32, %arg1: i32) -> (i32, i32) {
    %c0_i32 = arith.constant 0 : i32
    %c0_i32_0 = arith.constant 0 : i32
    return %c0_i32, %arg1 : i32, i32
  }
  func.func @transform_4(%arg0: i32, %arg1: i32) -> (i32, i32) {
    %c0_i32 = arith.constant 0 : i32
    %c0_i32_0 = arith.constant 0 : i32
    return %c0_i32, %arg1 : i32, i32
  }
  func.func @transform_5(%arg0: i32, %arg1: i32) -> (i32, i32) {
    %c0_i32 = arith.constant 0 : i32
    %c0_i32_0 = arith.constant 0 : i32
    return %arg1, %c0_i32 : i32, i32
  }
  func.func @transform_6(%arg0: i32, %arg1: i32) -> (i32, i32) {
    %c0_i32 = arith.constant 0 : i32
    %c0_i32_0 = arith.constant 0 : i32
    %c0_i32_1 = arith.constant 0 : i32
    return %c0_i32, %c0_i32_0 : i32, i32
  }
  func.func @transform_7(%arg0: i32, %arg1: i32) -> (i32, i32) {
    %c0_i32 = arith.constant 0 : i32
    %c0_i32_0 = arith.constant 0 : i32
    return %arg0, %c0_i32 : i32, i32
  }
}

</mosaic_0001>

<bundles_post_ra>
// kernel: tpu_custom_call.1
= control target key start
LH: loop header
LB: loop body
LE: loop exit
PB: predicated region body
PF: predicated region fallthrough
CT: control target
= control target key end

     0   :  { %s3058_s0 = inlined_call_operand.hbm [shape: f32[128,128], index: 0, kind: input, shape index: {}]   ;;  %s3059_s1 = inlined_call_operand.hbm [shape: f32[128,512], index: 1, kind: input, shape index: {}]   ;;  %s3060_s2 = inlined_call_operand.vmem [shape: f32[1,512], index: 2, kind: input, shape index: {}]   ;;  %s3061_s3 = inlined_call_operand.hbm [shape: f32[128,512], index: 3, kind: input, shape index: {}]   ;;  %s3062_s4 = inlined_call_operand.vmem [shape: f32[1,512], index: 4, kind: input, shape index: {}]   ;;  %s3063_s5 = inlined_call_operand.hbm [shape: f32[512,128], index: 5, kind: input, shape index: {}]   ;;  %s3064_s6 = inlined_call_operand.vmem [shape: f32[1,128], index: 6, kind: input, shape index: {}]   ;;  %s3065_s7 = inlined_call_operand.hbm [shape: f32[128,128], index: 7, kind: output, shape index: {}]  }
   0x1   :  { %3082 = sst [smem:[#allocation19_spill]] %s3059_s1 }
   0x2   :  { %3083 = sst [smem:[#allocation20_spill]] %s3065_s7 }
   0x3   :  { %12 = vsyncpa [#allocation4], 0 }
   0x4   :  { %13 = vsyncpa [#allocation7], 0 }
   0x5   :  { %15 = vsyncpa [#allocation7 + $0x1], 0 }
   0x6   :  { %16 = vsyncpa [#allocation10], 0 }
   0x7   :  { %18 = vsyncpa [#allocation10 + $0x1], 0 }
   0x8   :  { %19 = vsyncpa [#allocation5], 0  ;;  %s2315_s24 = smov 0   ;;  %s2317_s25 = smov 0  }
   0x9   :  { %s2319_s26 = smov 0   ;;  %s2321_s27 = smov 0  }
   0xa   :  { %s2323_s28 = smov 0   ;;  %s2325_s29 = smov 0  }
   0xb LB: > { %3084 = sst [smem:[#allocation16_spill]] %s2259_s29  ;;  %s34_s30 = sadd.s32 1, %s2255_s28  ;;  %s2259_s29 = sphi %s2325_s29, %s25_s29   ;;  %s2255_s28 = sphi %s2323_s28, %s3113_s28   ;;  %s2251_s27 = sphi %s2321_s27, %s3112_s27   ;;  %s2247_s26 = sphi %s2319_s26, %s3111_s26   ;;  %s2243_s25 = sphi %s2317_s25, %s3110_s25   ;;  %s2239_s24 = sphi %s2315_s24, %s3109_s24  }
   0xc   : > { %s70_s8 = sadd.s32 1, %s2247_s26  ;;  %p35_p0 = scmp.ge.s32.totalorder %s34_s30, 2 }
   0xd   : > { %p77_p1 = scmp.ne.s32.totalorder %s2247_s26, %s2243_s25  ;;  %p78_p2 = scmp.eq.s32.totalorder %s2259_s29, 0 }
   0xe   : > { %s3115_s30 = smov (%p35_p0, %s34_s30), 0  ;;  %p1862_p4 = scmp.lt.s32.totalorder %s2259_s29, 2 }
   0xf   : > { %3085 = sst [smem:[#allocation17_spill]] %s3115_s30  ;;  %p79_p3 = por %p78_p2, %p77_p1 }
  0x10   : > { %s67_s9 = ssub.s32 %s2255_s28, %s3115_s30  ;;  %s277_s10 = sand.u32 1, %s2259_s29  }
  0x11   : > { %p68_p5 = scmp.eq.s32.totalorder %s67_s9, 0  ;;  %s3066_s11 = sand.u32 1, %s2247_s26  }
  0x12   : > { %s1638_s12 = sshll.u32 %s2255_s28, 8  ;;  %s2363_s14 = sshll.u32 %s3066_s11, 8 }
  0x13   : > { %s2359_s13 = scalar_select %p68_p5, %s2247_s26, %s70_s8  }
  0x14   : > { %s3087_s1 = sld [smem:[#allocation19_spill]]  ;;  %p2372_p6 = pnand %p1862_p4, %p79_p3 }
  0x15   : > { %3086 = sst [smem:[#allocation18_spill]] %s2359_s13  ;;  %s281_s19 = scalar_lea.vmem [#allocation6], %s2363_s14 }
  0x16   : > { %s3088_s18 = scalar_select %p2372_p6, 1, 0 }
  0x17   : > { %s288_s20 = sshll.u32 %s281_s19, 4  ;;  %s2379_s21 = scalar_lea.sflag [#allocation7], %s277_s10  ;;  %s2377_s20 = int_to_ptr.vmem [resolvable:$true] %s288_s20 }
  0x18   : > { %p2385_p8 = pneg %p2372_p6 }
  0x1a   : > { %s2370_s17 = scalar_lea.hbm %s3087_s1, %s1638_s12  ;;  %s2058_s15 = scalar_lea.hbm %s3087_s1, 8192 }
  0x1b   : > { %s2053_s22 = scalar_lea.hbm %s2370_s17, 4096  ;;  %p2059_p11 = scmp.lt.u32.totalorder %s2370_s17, %s3087_s1 }
  0x1c   : > { %p2054_p7 = scmp.ne.s32.totalorder %s2370_s17, %s2053_s22  ;;  %p2060_p12 = scmp.lt.u32.totalorder %s2058_s15, %s2053_s22 }
  0x1d   : > { %s3089_s23 = scalar_select %p2385_p8, 1, 0 }
  0x1e   : > { %p2056_p9 = pnand %p2385_p8, %p2054_p7  ;;  %p2061_p13 = por %p2060_p12, %p2059_p11 }
  0x1f   : > { %p2062_p0 = scmp.lt.u32.totalorder %s2053_s22, %s2370_s17 }
  0x20   : > { %p2057_p10 = pneg %p2056_p9 }
  0x21   : > { %p2063_p1 = por %p2062_p0, %p2061_p13 }
  0x23   : > { %p2064_p2 = pnand %p2063_p1, %p2057_p10 }
  0x25   : > { %2067 = shalt.err (!%p2064_p2)
}
  0x26   : > { %s2068_s10 = scalar_lea.vmem %s2377_s20, 4096  ;;  %s2261_s8 = smov [#allocation6]  }
  0x27   : > { %p2069_p3 = scmp.ne.s32.totalorder %s2377_s20, %s2068_s10  ;;  %s2073_s9 = sshll.u32 %s2261_s8, 4  ;;  %s2074_s9 = int_to_ptr.vmem [resolvable:$false] %s2073_s9 }
  0x28   : > { %s2075_s16 = scalar_lea.vmem %s2074_s9, 8192  ;;  %p2076_p7 = scmp.lt.s32.totalorder %s2377_s20, %s2074_s9 }
  0x29   : > { %p2071_p4 = pnand %p2069_p3, %p2385_p8  ;;  %p2077_p9 = scmp.lt.s32.totalorder %s2075_s16, %s2068_s10 }
  0x2b   : > { %p2072_p5 = pneg %p2071_p4  ;;  %p2078_p11 = por %p2077_p9, %p2076_p7 }
  0x2d   : > { %p2079_p12 = pnand %p2078_p11, %p2072_p5 }
  0x2f   : > { %2082 = shalt.err (!%p2079_p12)
}
  0x30   : > { %s3067_s22 = smov 512   ;;  %s3068_s15 = smov 256  }
  0x31   : > { %s3069_s19 = smov 16   ;;  %s2417_s9 = scalar_lea.hbm %s3061_s3, %s1638_s12 }
  0x32   : > { %1854 = dma.hbm_to_vmem [thread:$0]  (!%p2372_p6), %s2370_s17, 4096, %s2377_s20, %s2379_s21, %s3067_s22, %s3068_s15, %s3069_s19  }
  0x33   : > { %s2420_s16 = sadd.s32 4294967295, %s2259_s29   ;;  %p83_p10 = scmp.ne.s32.totalorder %s2243_s25, %s2239_s24 }
  0x34   : > { %p3071_p13 = scmp.eq.s32.totalorder %s2420_s16, 0  ;;  %p1580_p0 = scmp.ge.s32.totalorder %s2259_s29, 1 }
  0x35   : > { %p245_p1 = scmp.lt.s32.totalorder %s2259_s29, 3  ;;  %s2265_s12 = smov [#allocation3]  }
  0x36   : > { %p2429_p2 = por %p3071_p13, %p83_p10  ;;  %s260_s20 = sshll.u32 %s2265_s12, 4  ;;  %s261_s20 = int_to_ptr.vmem [resolvable:$true] %s260_s20 }
  0x37   : > { %p2433_p3 = pnand %p1580_p0, %p245_p1  ;;  %s310_s10 = scalar_lea.vmem [#allocation8], %s2363_s14 }
  0x38   : > { %s3090_s11 = scalar_select %p2429_p2, 1, 0 }
  0x39   : > { %s3091_s17 = scalar_select %p2433_p3, 1, 0 }
  0x3a   : > { %p1847_p4 = pneg %p2433_p3  ;;  %s317_s8 = sshll.u32 %s310_s10, 4  ;;  %s2446_s8 = int_to_ptr.vmem [resolvable:$true] %s317_s8 }
  0x3b   : > { %s2083_s19 = scalar_lea.hbm %s3058_s0, 2048 }
  0x3c   : > { %p2441_p5 = pnand %p1847_p4, %p3071_p13  ;;  %p2084_p7 = scmp.ne.s32.totalorder %s3058_s0, %s2083_s19 }
  0x3d   : > { %p2090_p10 = scmp.lt.u32.totalorder %s2083_s19, %s3058_s0 }
  0x3e   : > { %p2085_p9 = pneg %p2441_p5 }
  0x40   : > { %p2086_p11 = pnand %p2085_p9, %p2084_p7 }
  0x42   : > { %p2087_p12 = pneg %p2086_p11 }
  0x44   : > { %p2092_p0 = pnand %p2090_p10, %p2087_p12 }
  0x46   : > { %2095 = shalt.err (!%p2092_p0)
}
  0x47   : > { %s2096_s10 = scalar_lea.vmem %s261_s20, 2048  ;;  %p2104_p2 = scmp.lt.s32.totalorder %s261_s20, %s261_s20 }
  0x48   : > { %p2097_p1 = scmp.ne.s32.totalorder %s261_s20, %s2096_s10  ;;  %p2105_p3 = scmp.lt.s32.totalorder %s2096_s10, %s2096_s10 }
  0x4a   : > { %p2099_p4 = pnand %p2097_p1, %p2085_p9  ;;  %p2106_p6 = por %p2105_p3, %p2104_p2 }
  0x4c   : > { %p2100_p13 = pneg %p2099_p4 }
  0x4e   : > { %p2107_p8 = pnand %p2106_p6, %p2100_p13 }
  0x50   : > { %2110 = shalt.err (!%p2107_p8)
}
  0x51   : > { %s3080_s1 = smov 128   ;;  %s3081_s30 = smov 8  }
  0x52   : > { %1850 = dma.hbm_to_vmem [thread:$0]  (!%p2441_p5), %s3058_s0, 2048, %s261_s20, [#allocation4], %s3080_s1, %s3080_s1, %s3081_s30  }
  0x53   : > { %s2111_s15 = scalar_lea.hbm %s2417_s9, 4096  ;;  %p3093_p6 = scmp.ne.s32.totalorder %s3089_s23, 0 }
  0x54   : > { %p2112_p2 = scmp.ne.s32.totalorder %s2417_s9, %s2111_s15  ;;  %s2116_s10 = scalar_lea.hbm %s3061_s3, 8192 }
  0x55   : > { %p2117_p3 = scmp.lt.u32.totalorder %s2417_s9, %s3061_s3  ;;  %p2118_p7 = scmp.lt.u32.totalorder %s2116_s10, %s2111_s15 }
  0x56   : > { %p2114_p8 = pnand %p2112_p2, %p3093_p6  ;;  %p2120_p11 = scmp.lt.u32.totalorder %s2111_s15, %s2417_s9 }
  0x57   : > { %p2119_p9 = por %p2118_p7, %p2117_p3 }
  0x58   : > { %p2115_p13 = pneg %p2114_p8 }
  0x59   : > { %p2121_p12 = por %p2120_p11, %p2119_p9 }
  0x5b   : > { %p2122_p10 = pnand %p2121_p12, %p2115_p13 }
  0x5d   : > { %2125 = shalt.err (!%p2122_p10)
}
  0x5e   : > { %s2126_s20 = scalar_lea.vmem %s2446_s8, 4096  ;;  %s2268_s24 = smov [#allocation8]  }
  0x5f   : > { %p2127_p5 = scmp.ne.s32.totalorder %s2446_s8, %s2126_s20  ;;  %s2131_s13 = sshll.u32 %s2268_s24, 4  ;;  %s2132_s13 = int_to_ptr.vmem [resolvable:$false] %s2131_s13 }
  0x60   : > { %s2133_s7 = scalar_lea.vmem %s2132_s13, 8192  ;;  %p2134_p4 = scmp.lt.s32.totalorder %s2446_s8, %s2132_s13 }
  0x61   : > { %p2129_p0 = pnand %p2127_p5, %p3093_p6  ;;  %p2135_p2 = scmp.lt.s32.totalorder %s2133_s7, %s2126_s20 }
  0x63   : > { %p2130_p1 = pneg %p2129_p0  ;;  %p2136_p8 = por %p2135_p2, %p2134_p4 }
  0x65   : > { %p2137_p3 = pnand %p2136_p8, %p2130_p1 }
  0x67   : > { %2140 = shalt.err (!%p2137_p3)
}
  0x68   : > { %p3094_p13 = scmp.ne.s32.totalorder %s3088_s18, 0  ;;  %s3095_s29 = smov 16  }
  0x69   : > { %s3096_s22 = smov 256   ;;  %s3097_s15 = smov 512  }
  0x6a   : > { %1857 = dma.hbm_to_vmem [thread:$0]  (!%p3094_p13), %s2417_s9, 4096, %s2446_s8, %s2379_s21, %s3097_s15, %s3096_s22, %s3095_s29  }
  0x6b   : > { %s1640_s19 = sshll.u32 %s2255_s28, 12  ;;  %s339_s12 = scalar_lea.vmem [#allocation9], %s2363_s14 }
  0x6c   : > { %s346_s10 = sshll.u32 %s339_s12, 4  ;;  %s2497_s13 = scalar_lea.hbm %s3063_s5, %s1640_s19  ;;  %s2499_s10 = int_to_ptr.vmem [resolvable:$true] %s346_s10 }
  0x6d   : > { %s3098_s7 = sand.u32 1, %s2247_s26   ;;  %s2141_s30 = scalar_lea.hbm %s2497_s13, 4096 }
  0x6e   : > { %s2503_s1 = scalar_lea.sflag [#allocation10], %s3098_s7  ;;  %p2142_p7 = scmp.ne.s32.totalorder %s2497_s13, %s2141_s30 }
  0x6f   : > { %s2146_s9 = scalar_lea.hbm %s3063_s5, 8192  ;;  %p2147_p12 = scmp.lt.u32.totalorder %s2497_s13, %s3063_s5 }
  0x70   : > { %p2144_p9 = pnand %p2142_p7, %p3093_p6  ;;  %p2148_p10 = scmp.lt.u32.totalorder %s2146_s9, %s2141_s30 }
  0x71   : > { %p2150_p0 = scmp.lt.u32.totalorder %s2141_s30, %s2497_s13 }
  0x72   : > { %p2145_p11 = pneg %p2144_p9  ;;  %p2149_p5 = por %p2148_p10, %p2147_p12 }
  0x74   : > { %p2151_p1 = por %p2150_p0, %p2149_p5 }
  0x76   : > { %p2152_p4 = pnand %p2151_p1, %p2145_p11 }
  0x78   : > { %2155 = shalt.err (!%p2152_p4)
}
  0x79   : > { %s2156_s22 = scalar_lea.vmem %s2499_s10, 4096  ;;  %s2269_s15 = smov [#allocation9]  }
  0x7a   : > { %p2157_p2 = scmp.ne.s32.totalorder %s2499_s10, %s2156_s22  ;;  %s2161_s19 = sshll.u32 %s2269_s15, 4  ;;  %s2162_s19 = int_to_ptr.vmem [resolvable:$false] %s2161_s19 }
  0x7b   : > { %s2163_s12 = scalar_lea.vmem %s2162_s19, 8192  ;;  %p2164_p7 = scmp.lt.s32.totalorder %s2499_s10, %s2162_s19 }
  0x7c   : > { %p2159_p8 = pnand %p2157_p2, %p3093_p6  ;;  %p2165_p9 = scmp.lt.s32.totalorder %s2163_s12, %s2156_s22 }
  0x7e   : > { %p2160_p3 = pneg %p2159_p8  ;;  %p2166_p12 = por %p2165_p9, %p2164_p7 }
  0x80   : > { %p2167_p10 = pnand %p2166_p12, %p2160_p3 }
  0x82   : > { %2170 = shalt.err (!%p2167_p10)
}
  0x83   : > { %s3099_s30 = smov 8   ;;  %s3100_s20 = smov 128  }
  0x84   : > { %1860 = dma.hbm_to_vmem [thread:$0]  (!%p3094_p13), %s2497_s13, 4096, %s2499_s10, %s2503_s1, %s3100_s20, %s3100_s20, %s3099_s30  }
  0x85   : > { %p3101_p6 = scmp.ne.s32.totalorder %s3091_s17, 0 }
  0x86   : > { %p3102_p11 = scmp.eq.s32.totalorder (!%p3101_p6), %s2420_s16, 0 }
  0x87   : > { %358 = sbr.rel (%p3101_p6) target bundleno = 788 (0x314), region = 48 }
  0x8e   : > { %2222 = dma.done.wait (%p3102_p11), [#allocation4], 2048   ;;  %p3103_p5 = pmov %p3102_p11 }
  0x8f   : > { %s364_s18 = sand.u32 1, %s2420_s16   ;;  %s366_s23 = sand.u32 1, %s2243_s25  }
  0x90   : > { %2224 = vsyncadd (%p3103_p5), [#allocation4], 4294965248  ;;  %s1594_s24 = sshll.u32 %s366_s23, 8  ;;  %s365_s7 = scalar_lea.sflag [#allocation7], %s364_s18 }
  0x91   : > { %s2538_s14 = scalar_lea.vmem [#allocation6], %s1594_s24  ;;  %p3104_p0 = scmp.ne.s32.totalorder %s3090_s11, 0 }
  0x93   : > { %2226 = dma.done.wait (%p3104_p0), %s365_s7, 8192  }
  0x94   : > { %2228 = vsyncadd (%p3104_p0), %s365_s7, 4294959104  ;;  %s2544_s17 = scalar_lea.vmem [#allocation8], %s1594_s24  ;;  %s383_s1 = scalar_lea.sflag [#allocation10], %s366_s23 }
  0x95   : > { %s2546_s10 = scalar_lea.vmem [#allocation9], %s1594_s24 }
  0x96   : > { %2230 = dma.done.wait (%p3104_p0), %s383_s1, 4096  }
  0x97   : > { %2232 = vsyncadd (%p3104_p0), %s383_s1, 4294963200  ;;  %s1597_s13 = sshll.u32 %s2251_s27, 1  ;;  %p1599_p1 = scmp.ne.s32.totalorder %s2251_s27, 0 }
  0x98   : > { %p433_p13 = scmp.lt.s32.totalorder %s1597_s13, 3  ;;  %v2270_v0 = vmov (!%p1599_p1), 0.0  }
  0x99   : > { %448 = sbr.rel (%p1599_p1) target bundleno = 161 (0xa1), region = 68  ;;  %449 = vst [vmem:[#allocation2] sm:$0xff] (!%p1599_p1), %v2270_v0  ;;  %450 = vst [vmem:[#allocation2 + $0x8] sm:$0xff] (!%p1599_p1), %v2270_v0 }
  0x9a   : > { %s3117_s13 = smov (!%p433_p13, %s1597_s13), 3  ;;  %451 = vst [vmem:[#allocation2 + $0x10] sm:$0xff] (!%p1599_p1), %v2270_v0  ;;  %452 = vst [vmem:[#allocation2 + $0x18] sm:$0xff] (!%p1599_p1), %v2270_v0 }
  0x9b   : > { %s435_s8 = scalar_lea.vmem %s3060_s2, %s3117_s13  ;;  %s441_s15 = scalar_lea.vmem %s3062_s4, %s3117_s13  ;;  %453 = vst [vmem:[#allocation2 + $0x20] sm:$0xff] (!%p1599_p1), %v2270_v0  ;;  %454 = vst [vmem:[#allocation2 + $0x28] sm:$0xff] (!%p1599_p1), %v2270_v0 }
  0x9c   : > { %455 = vst [vmem:[#allocation2 + $0x30] sm:$0xff] (!%p1599_p1), %v2270_v0  ;;  %456 = vst [vmem:[#allocation2 + $0x38] sm:$0xff] (!%p1599_p1), %v2270_v0 }
  0x9d   : > { %457 = vst [vmem:[#allocation2 + $0x40] sm:$0xff] (!%p1599_p1), %v2270_v0  ;;  %458 = vst [vmem:[#allocation2 + $0x48] sm:$0xff] (!%p1599_p1), %v2270_v0 }
  0x9e   : > { %459 = vst [vmem:[#allocation2 + $0x50] sm:$0xff] (!%p1599_p1), %v2270_v0  ;;  %460 = vst [vmem:[#allocation2 + $0x58] sm:$0xff] (!%p1599_p1), %v2270_v0 }
  0x9f   : > { %461 = vst [vmem:[#allocation2 + $0x60] sm:$0xff] (!%p1599_p1), %v2270_v0  ;;  %462 = vst [vmem:[#allocation2 + $0x68] sm:$0xff] (!%p1599_p1), %v2270_v0 }
  0xa0   : > { %463 = vst [vmem:[#allocation2 + $0x70] sm:$0xff] %v2270_v0  ;;  %464 = vst [vmem:[#allocation2 + $0x78] sm:$0xff] %v2270_v0 }
  0xa1 PF: > { %v482_v1 = vld [vmem:[%s2538_s14 + $0x8] sm:$0xff]  ;;  %v484_v2 = vld [vmem:[%s2538_s14 + $0x18] sm:$0xff]  ;;  %v481_v3 = vld [vmem:[%s2538_s14] sm:$0xff]  ;;  %v2271_v8 = vmov 0.0   ;;  %p1632_p4 = scmp.ne.s32.totalorder %s2251_s27, 1 }
  0xa2   : > { %v1721_v4 = vpack.c.bf16 %v484_v2, %v482_v1  ;;  %v483_v5 = vld [vmem:[%s2538_s14 + $0x10] sm:$0xff]  ;;  %v486_v6 = vld [vmem:[%s2538_s14 + $0x28] sm:$0xff]  ;;  %v488_v7 = vld [vmem:[%s2538_s14 + $0x38] sm:$0xff]  ;;  %589 = vmatprep.mubr.f32.mxu0 %v2271_v8  ;;  %637 = vmatprep.mubr.f32.mxu1 %v2271_v8 }
  0xa3   : > { %v1723_v9 = vpack.c.bf16 %v483_v5, %v481_v3  ;;  %v1725_v10 = vpack.c.bf16 %v488_v7, %v486_v6  ;;  %v485_v11 = vld [vmem:[%s2538_s14 + $0x20] sm:$0xff]  ;;  %v487_v12 = vld [vmem:[%s2538_s14 + $0x30] sm:$0xff]  ;;  %v490_v13 = vld [vmem:[%s2538_s14 + $0x48] sm:$0xff] }
  0xa4   : > { %1722 = vmatprep.subr.bf16.mxu0 %v1721_v4  ;;  %1817 = vmatprep.subr.bf16.mxu1 %v1721_v4  ;;  %v492_v14 = vld [vmem:[%s2538_s14 + $0x58] sm:$0xff]  ;;  %v1727_v15 = vpack.c.bf16 %v487_v12, %v485_v11  ;;  %v489_v17 = vld [vmem:[%s2538_s14 + $0x40] sm:$0xff]  ;;  %v491_v18 = vld [vmem:[%s2538_s14 + $0x50] sm:$0xff] }
  0xa5   : > { %1724 = vmatpush1.bf16.msra.mxu0 %v1723_v9  ;;  %1825 = vmatpush1.bf16.msra.mxu1 %v1723_v9  ;;  %v1729_v16 = vpack.c.bf16 %v492_v14, %v490_v13  ;;  %v494_v19 = vld [vmem:[%s2538_s14 + $0x68] sm:$0xff]  ;;  %v496_v20 = vld [vmem:[%s2538_s14 + $0x78] sm:$0xff]  ;;  %v1731_v21 = vpack.c.bf16 %v491_v18, %v489_v17  ;;  %v493_v23 = vld [vmem:[%s2538_s14 + $0x60] sm:$0xff] }
  0xa6   : > { %1726 = vmatprep.subr.bf16.mxu0 %v1725_v10  ;;  %1818 = vmatprep.subr.bf16.mxu1 %v1725_v10  ;;  %v1733_v22 = vpack.c.bf16 %v496_v20, %v494_v19  ;;  %v495_v24 = vld [vmem:[%s2538_s14 + $0x70] sm:$0xff]  ;;  %v498_v25 = vld [vmem:[%s2538_s14 + $0x88] sm:$0xff]  ;;  %v500_v26 = vld [vmem:[%s2538_s14 + $0x98] sm:$0xff] }
  0xa7   : > { %v1735_v27 = vpack.c.bf16 %v495_v24, %v493_v23  ;;  %v1737_v28 = vpack.c.bf16 %v500_v26, %v498_v25  ;;  %v497_v29 = vld [vmem:[%s2538_s14 + $0x80] sm:$0xff]  ;;  %v499_v30 = vld [vmem:[%s2538_s14 + $0x90] sm:$0xff]  ;;  %v502_v31 = vld [vmem:[%s2538_s14 + $0xa8] sm:$0xff] }
  0xa8   : > { %v504_v32 = vld [vmem:[%s2538_s14 + $0xb8] sm:$0xff]  ;;  %v1739_v33 = vpack.c.bf16 %v499_v30, %v497_v29  ;;  %v501_v35 = vld [vmem:[%s2538_s14 + $0xa0] sm:$0xff]  ;;  %v503_v36 = vld [vmem:[%s2538_s14 + $0xb0] sm:$0xff] }
  0xa9   : > { %1728 = vmatpush1.bf16.msra.mxu0 %v1727_v15  ;;  %1826 = vmatpush1.bf16.msra.mxu1 %v1727_v15  ;;  %v1741_v34 = vpack.c.bf16 %v504_v32, %v502_v31  ;;  %v506_v37 = vld [vmem:[%s2538_s14 + $0xc8] sm:$0xff]  ;;  %v508_v38 = vld [vmem:[%s2538_s14 + $0xd8] sm:$0xff]  ;;  %v1743_v39 = vpack.c.bf16 %v503_v36, %v501_v35  ;;  %v505_v41 = vld [vmem:[%s2538_s14 + $0xc0] sm:$0xff] }
  0xaa   : > { %1730 = vmatprep.subr.bf16.mxu0 %v1729_v16  ;;  %1819 = vmatprep.subr.bf16.mxu1 %v1729_v16  ;;  %v1745_v40 = vpack.c.bf16 %v508_v38, %v506_v37  ;;  %v507_v42 = vld [vmem:[%s2538_s14 + $0xd0] sm:$0xff]  ;;  %v510_v43 = vld [vmem:[%s2538_s14 + $0xe8] sm:$0xff]  ;;  %v512_v44 = vld [vmem:[%s2538_s14 + $0xf8] sm:$0xff] }
  0xab   : > { %v1747_v45 = vpack.c.bf16 %v507_v42, %v505_v41  ;;  %v1749_v46 = vpack.c.bf16 %v512_v44, %v510_v43  ;;  %v509_v47 = vld [vmem:[%s2538_s14 + $0xe0] sm:$0xff]  ;;  %v511_v48 = vld [vmem:[%s2538_s14 + $0xf0] sm:$0xff]  ;;  %v687_v49 = vld [vmem:[%s2544_s17 + $0x8] sm:$0xff] }
  0xac   : > { %v689_v50 = vld [vmem:[%s2544_s17 + $0x18] sm:$0xff]  ;;  %v1751_v51 = vpack.c.bf16 %v511_v48, %v509_v47  ;;  %v686_v53 = vld [vmem:[%s2544_s17] sm:$0xff]  ;;  %v688_v54 = vld [vmem:[%s2544_s17 + $0x10] sm:$0xff] }
  0xad   : > { %1732 = vmatpush1.bf16.msra.mxu0 %v1731_v21  ;;  %1827 = vmatpush1.bf16.msra.mxu1 %v1731_v21  ;;  %v1753_v52 = vpack.c.bf16 %v689_v50, %v687_v49  ;;  %v691_v55 = vld [vmem:[%s2544_s17 + $0x28] sm:$0xff]  ;;  %v693_v56 = vld [vmem:[%s2544_s17 + $0x38] sm:$0xff]  ;;  %v2604_v57 = vld [vmem:[#allocation3] sm:$0xff]  ;;  %v1755_v59 = vpack.c.bf16 %v688_v54, %v686_v53 }
  0xae   : > { %1734 = vmatprep.subr.bf16.mxu0 %v1733_v22  ;;  %1820 = vmatprep.subr.bf16.mxu1 %v1733_v22  ;;  %v2606_v58 = vld [vmem:[#allocation3 + $0x40] sm:$0xff]  ;;  %v1757_v60 = vpack.c.bf16 %v693_v56, %v691_v55  ;;  %v692_v62 = vld [vmem:[%s2544_s17 + $0x30] sm:$0xff]  ;;  %v695_v63 = vld [vmem:[%s2544_s17 + $0x48] sm:$0xff] }
  0xaf   : > { %v690_v61 = vld [vmem:[%s2544_s17 + $0x20] sm:$0xff]  ;;  %v697_v0 = vld [vmem:[%s2544_s17 + $0x58] sm:$0xff]  ;;  %v2615_v1 = vld [vmem:[#allocation3 + $0x8] sm:$0xff] }
  0xb0   : > { %v2617_v2 = vld [vmem:[#allocation3 + $0x48] sm:$0xff]  ;;  %v1759_v3 = vpack.c.bf16 %v692_v62, %v690_v61  ;;  %v1761_v4 = vpack.c.bf16 %v697_v0, %v695_v63  ;;  %v694_v5 = vld [vmem:[%s2544_s17 + $0x40] sm:$0xff]  ;;  %v696_v6 = vld [vmem:[%s2544_s17 + $0x50] sm:$0xff] }
  0xb1   : > { %1736 = vmatpush1.bf16.msra.mxu0 %v1735_v27  ;;  %1828 = vmatpush1.bf16.msra.mxu1 %v1735_v27  ;;  %v699_v7 = vld [vmem:[%s2544_s17 + $0x68] sm:$0xff]  ;;  %v701_v9 = vld [vmem:[%s2544_s17 + $0x78] sm:$0xff]  ;;  %v2627_v10 = vld [vmem:[#allocation3 + $0x10] sm:$0xff]  ;;  %v1763_v12 = vpack.c.bf16 %v696_v6, %v694_v5 }
  0xb2   : > { %1738 = vmatprep.subr.bf16.mxu0 %v1737_v28  ;;  %1821 = vmatprep.subr.bf16.mxu1 %v1737_v28  ;;  %v2629_v11 = vld [vmem:[#allocation3 + $0x50] sm:$0xff]  ;;  %v1765_v13 = vpack.c.bf16 %v701_v9, %v699_v7  ;;  %v698_v14 = vld [vmem:[%s2544_s17 + $0x60] sm:$0xff]  ;;  %v703_v16 = vld [vmem:[%s2544_s17 + $0x88] sm:$0xff] }
  0xb3   : > { %v700_v15 = vld [vmem:[%s2544_s17 + $0x70] sm:$0xff]  ;;  %v705_v17 = vld [vmem:[%s2544_s17 + $0x98] sm:$0xff]  ;;  %v702_v22 = vld [vmem:[%s2544_s17 + $0x80] sm:$0xff] }
  0xb4   : > { %v2639_v18 = vld [vmem:[#allocation3 + $0x18] sm:$0xff]  ;;  %v1767_v20 = vpack.c.bf16 %v700_v15, %v698_v14  ;;  %v1769_v21 = vpack.c.bf16 %v705_v17, %v703_v16  ;;  %v704_v23 = vld [vmem:[%s2544_s17 + $0x90] sm:$0xff]  ;;  %v707_v24 = vld [vmem:[%s2544_s17 + $0xa8] sm:$0xff] }
  0xb5   : > { %1740 = vmatpush1.bf16.msra.mxu0 %v1739_v33  ;;  %1829 = vmatpush1.bf16.msra.mxu1 %v1739_v33  ;;  %v2641_v19 = vld [vmem:[#allocation3 + $0x58] sm:$0xff]  ;;  %v469_v26 = vld [vmem:[#allocation3 + $0x20] sm:$0xff]  ;;  %v1771_v28 = vpack.c.bf16 %v704_v23, %v702_v22  ;;  %v708_v31 = vld [vmem:[%s2544_s17 + $0xb0] sm:$0xff] }
  0xb6   : > { %1742 = vmatprep.subr.bf16.mxu0 %v1741_v34  ;;  %1822 = vmatprep.subr.bf16.mxu1 %v1741_v34  ;;  %v709_v25 = vld [vmem:[%s2544_s17 + $0xb8] sm:$0xff]  ;;  %v2651_v27 = vld [vmem:[#allocation3 + $0x60] sm:$0xff]  ;;  %v711_v32 = vld [vmem:[%s2544_s17 + $0xc8] sm:$0xff] }
  0xb7   : > { %v1773_v29 = vpack.c.bf16 %v709_v25, %v707_v24  ;;  %v706_v30 = vld [vmem:[%s2544_s17 + $0xa0] sm:$0xff]  ;;  %v713_v33 = vld [vmem:[%s2544_s17 + $0xd8] sm:$0xff]  ;;  %v470_v34 = vld [vmem:[#allocation3 + $0x28] sm:$0xff] }
  0xb8   : > { %v478_v35 = vld [vmem:[#allocation3 + $0x68] sm:$0xff]  ;;  %v1775_v36 = vpack.c.bf16 %v708_v31, %v706_v30  ;;  %v1777_v37 = vpack.c.bf16 %v713_v33, %v711_v32  ;;  %v710_v38 = vld [vmem:[%s2544_s17 + $0xc0] sm:$0xff]  ;;  %v717_v41 = vld [vmem:[%s2544_s17 + $0xf8] sm:$0xff] }
  0xb9   : > { %1744 = vmatpush1.bf16.msra.mxu0 %v1743_v39  ;;  %1830 = vmatpush1.bf16.msra.mxu1 %v1743_v39  ;;  %v712_v39 = vld [vmem:[%s2544_s17 + $0xd0] sm:$0xff]  ;;  %v472_v48 = vld [vmem:[#allocation3 + $0x38] sm:$0xff]  ;;  %v1163_v54 = vld [vmem:[%s2546_s10] sm:$0xff] }
  0xba   : > { %1746 = vmatprep.subr.bf16.mxu0 %v1745_v40  ;;  %1823 = vmatprep.subr.bf16.mxu1 %v1745_v40  ;;  %v715_v40 = vld [vmem:[%s2544_s17 + $0xe8] sm:$0xff]  ;;  %v471_v42 = vld [vmem:[#allocation3 + $0x30] sm:$0xff]  ;;  %v1779_v44 = vpack.c.bf16 %v712_v39, %v710_v38  ;;  %v480_v49 = vld [vmem:[#allocation3 + $0x78] sm:$0xff] }
  0xbb   : > { %v479_v43 = vld [vmem:[#allocation3 + $0x70] sm:$0xff]  ;;  %v1164_v55 = vld [vmem:[%s2546_s10 + $0x8] sm:$0xff]  ;;  %v1183_v62 = vld [vmem:[%s2546_s10 + $0xa0] sm:$0xff] }
  0xbc   : > { %v716_v47 = vld [vmem:[%s2544_s17 + $0xf0] sm:$0xff]  ;;  %v1787_v56 = vpack.c.bf16 %v1164_v55, %v1163_v54  ;;  %v1184_v63 = vld [vmem:[%s2546_s10 + $0xa8] sm:$0xff]  ;;  %v1186_v5 = vld [vmem:[%s2546_s10 + $0xb8] sm:$0xff] }
  0xbd   : > { %1748 = vmatpush1.bf16.msra.mxu0 %v1747_v45  ;;  %1831 = vmatpush1.bf16.msra.mxu1 %v1747_v45  ;;  %v1781_v45 = vpack.c.bf16 %v717_v41, %v715_v40  ;;  %v1793_v0 = vpack.c.bf16 %v1184_v63, %v1183_v62  ;;  %v1169_v7 = vld [vmem:[%s2546_s10 + $0x30] sm:$0xff]  ;;  %v1170_v9 = vld [vmem:[%s2546_s10 + $0x38] sm:$0xff]  ;;  %v1171_v14 = vld [vmem:[%s2546_s10 + $0x40] sm:$0xff] }
  0xbe   : > { %1750 = vmatprep.subr.bf16.mxu0 %v1749_v46  ;;  %1824 = vmatprep.subr.bf16.mxu1 %v1749_v46  ;;  %v714_v46 = vld [vmem:[%s2544_s17 + $0xe0] sm:$0xff]  ;;  %v1172_v15 = vld [vmem:[%s2546_s10 + $0x48] sm:$0xff]  ;;  %v1189_v17 = vld [vmem:[%s2546_s10 + $0xd0] sm:$0xff] }
  0xbf   : > { %v1783_v50 = vpack.c.bf16 %v716_v47, %v714_v46  ;;  %v1803_v16 = vpack.c.bf16 %v1172_v15, %v1171_v14  ;;  %v1191_v23 = vld [vmem:[%s2546_s10 + $0xe0] sm:$0xff]  ;;  %v1192_v24 = vld [vmem:[%s2546_s10 + $0xe8] sm:$0xff]  ;;  %v1194_v30 = vld [vmem:[%s2546_s10 + $0xf8] sm:$0xff] }
  0xc0   : > { %v1809_v25 = vpack.c.bf16 %v1192_v24, %v1191_v23  ;;  %v1177_v32 = vld [vmem:[%s2546_s10 + $0x70] sm:$0xff]  ;;  %v1178_v33 = vld [vmem:[%s2546_s10 + $0x78] sm:$0xff]  ;;  %v513_v38 = vld [vmem:[%s435_s8] sm:$0x3] }
  0xc1   : > { %1752 = vmatpush1.bf16.msra.mxu0 %v1751_v51  ;;  %1832 = vmatpush1.bf16.msra.mxu1 %v1751_v51  ;;  %v1179_v51 = vld [vmem:[%s2546_s10 + $0x80] sm:$0xff] }
  0xc2   : > { %1754 = vmatprep.subr.bf16.mxu1 %v1753_v52  ;;  %v1180_v52 = vld [vmem:[%s2546_s10 + $0x88] sm:$0xff] }
  0xc3   : > { %v1785_v53 = vpack.c.bf16 %v1180_v52, %v1179_v51 }
  0xc4   : > { %590 = vmatmul.mubr.f32.vlgmr.msra.gmra.mrb[0].mxu0 %v2604_v57  ;;  %638 = vmatmul.mubr.f32.vlgmr.msra.gmra.mrb[0].mxu1 %v2606_v58 }
  0xc5   : > { %1756 = vmatpush1.bf16.msra.mxu1 %v1755_v59  ;;  %595 = vmatprep.mubr.f32.mxu0 %v2271_v8 }
  0xc6   : > { %643 = vmatprep.mubr.f32.mxu1 %v2271_v8  ;;  %1758 = vmatprep.subr.bf16.mxu1 %v1757_v60  ;;  %v1166_v60 = vld [vmem:[%s2546_s10 + $0x18] sm:$0xff] }
  0xc7   : > { %1786 = vmatprep.subr.bf16.mxu0 %v1785_v53 }
  0xc8   : > { %596 = vmatmul.mubr.f32.gmra.mrb[2].mxu0 %v2615_v1  ;;  %644 = vmatmul.mubr.f32.gmra.mrb[2].mxu1 %v2617_v2 }
  0xc9   : > { %1760 = vmatpush1.bf16.msra.mxu1 %v1759_v3  ;;  %601 = vmatprep.mubr.f32.mxu0 %v2271_v8 }
  0xca   : > { %649 = vmatprep.mubr.f32.mxu1 %v2271_v8  ;;  %1762 = vmatprep.subr.bf16.mxu1 %v1761_v4  ;;  %v1185_v4 = vld [vmem:[%s2546_s10 + $0xb0] sm:$0xff] }
  0xcb   : > { %1788 = vmatpush3.bf16.msra.mxu0 %v1787_v56  ;;  %v1797_v6 = vpack.c.bf16 %v1186_v5, %v1185_v4 }
  0xcc   : > { %602 = vmatmul.mubr.f32.gmra.mrb[4].mxu0 %v2627_v10  ;;  %650 = vmatmul.mubr.f32.gmra.mrb[4].mxu1 %v2629_v11 }
  0xcd   : > { %1764 = vmatpush1.bf16.msra.mxu1 %v1763_v12  ;;  %607 = vmatprep.mubr.f32.mxu0 %v2271_v8  ;;  %v1188_v12 = vld [vmem:[%s2546_s10 + $0xc8] sm:$0xff] }
  0xce   : > { %655 = vmatprep.mubr.f32.mxu1 %v2271_v8  ;;  %1766 = vmatprep.subr.bf16.mxu1 %v1765_v13 }
  0xd0   : > { %608 = vmatmul.mubr.f32.gmra.mrb[6].mxu0 %v2639_v18  ;;  %656 = vmatmul.mubr.f32.gmra.mrb[6].mxu1 %v2641_v19 }
  0xd1   : > { %1768 = vmatpush1.bf16.msra.mxu1 %v1767_v20  ;;  %613 = vmatprep.mubr.f32.mxu0 %v2271_v8  ;;  %v1173_v20 = vld [vmem:[%s2546_s10 + $0x50] sm:$0xff] }
  0xd2   : > { %661 = vmatprep.mubr.f32.mxu1 %v2271_v8  ;;  %1770 = vmatprep.subr.bf16.mxu1 %v1769_v21  ;;  %v1174_v21 = vld [vmem:[%s2546_s10 + $0x58] sm:$0xff] }
  0xd3   : > { %v1807_v22 = vpack.c.bf16 %v1174_v21, %v1173_v20 }
  0xd4   : > { %614 = vmatmul.mubr.f32.gmra.mrb[8].mxu0 %v469_v26  ;;  %662 = vmatmul.mubr.f32.gmra.mrb[8].mxu1 %v2651_v27 }
  0xd5   : > { %1772 = vmatpush1.bf16.msra.mxu1 %v1771_v28  ;;  %619 = vmatprep.mubr.f32.mxu0 %v2271_v8 }
  0xd6   : > { %667 = vmatprep.mubr.f32.mxu1 %v2271_v8  ;;  %1774 = vmatprep.subr.bf16.mxu1 %v1773_v29  ;;  %v1193_v29 = vld [vmem:[%s2546_s10 + $0xf0] sm:$0xff] }
  0xd7   : > { %v1813_v31 = vpack.c.bf16 %v1194_v30, %v1193_v29 }
  0xd8   : > { %620 = vmatmul.mubr.f32.gmra.mrb[10].mxu0 %v470_v34  ;;  %668 = vmatmul.mubr.f32.gmra.mrb[10].mxu1 %v478_v35 }
  0xd9   : > { %1776 = vmatpush1.bf16.msra.mxu1 %v1775_v36  ;;  %625 = vmatprep.mubr.f32.mxu0 %v2271_v8 }
  0xda   : > { %673 = vmatprep.mubr.f32.mxu1 %v2271_v8  ;;  %1778 = vmatprep.subr.bf16.mxu1 %v1777_v37 }
  0xdc   : > { %626 = vmatmul.mubr.f32.gmra.mrb[12].mxu0 %v471_v42  ;;  %674 = vmatmul.mubr.f32.gmra.mrb[12].mxu1 %v479_v43 }
  0xdd   : > { %1780 = vmatpush1.bf16.msra.mxu1 %v1779_v44  ;;  %631 = vmatprep.mubr.f32.mxu0 %v2271_v8 }
  0xde   : > { %679 = vmatprep.mubr.f32.mxu1 %v2271_v8  ;;  %1782 = vmatprep.subr.bf16.mxu1 %v1781_v45 }
  0xe0   : > { %632 = vmatmul.mubr.f32.gmra.mrb[14].mxu0 %v472_v48  ;;  %680 = vmatmul.mubr.f32.gmra.mrb[14].mxu1 %v480_v49 }
  0xe1   : > { %1784 = vmatpush1.bf16.msra.mxu1 %v1783_v50  ;;  %794 = vmatprep.mubr.f32.mxu1 %v2271_v8 }
  0xe4   : > { %795 = vmatmul.mubr.f32.vlgmr.msra.gmra.mrb[16].mxu1 %v2604_v57  ;;  %v1181_v57 = vld [vmem:[%s2546_s10 + $0x90] sm:$0xff] }
  0xe5   : > { %800 = vmatprep.mubr.f32.mxu1 %v2271_v8 }
  0xe8   : > { %801 = vmatmul.mubr.f32.gmra.mrb[18].mxu1 %v2615_v1  ;;  %v1167_v1 = vld [vmem:[%s2546_s10 + $0x20] sm:$0xff] }
  0xe9   : > { %806 = vmatprep.mubr.f32.mxu1 %v2271_v8 }
  0xec   : > { %807 = vmatmul.mubr.f32.gmra.mrb[20].mxu1 %v2627_v10  ;;  %v1799_v10 = vpack.c.bf16 %v1170_v9, %v1169_v7 }
  0xed   : > { %812 = vmatprep.mubr.f32.mxu1 %v2271_v8 }
  0xf0   : > { %813 = vmatmul.mubr.f32.gmra.mrb[22].mxu1 %v2639_v18  ;;  %v1190_v18 = vld [vmem:[%s2546_s10 + $0xd8] sm:$0xff] }
  0xf1   : > { %818 = vmatprep.mubr.f32.mxu1 %v2271_v8 }
  0xf4   : > { %819 = vmatmul.mubr.f32.gmra.mrb[24].mxu1 %v469_v26  ;;  %v1175_v26 = vld [vmem:[%s2546_s10 + $0x60] sm:$0xff] }
  0xf5   : > { %824 = vmatprep.mubr.f32.mxu1 %v2271_v8 }
  0xf8   : > { %825 = vmatmul.mubr.f32.gmra.mrb[26].mxu1 %v470_v34  ;;  %v1815_v34 = vpack.c.bf16 %v1178_v33, %v1177_v32 }
  0xf9   : > { %830 = vmatprep.mubr.f32.mxu1 %v2271_v8 }
  0xfc   : > { %831 = vmatmul.mubr.f32.gmra.mrb[28].mxu1 %v471_v42 }
  0xfd   : > { %836 = vmatprep.mubr.f32.mxu1 %v2271_v8 }
 0x100   : > { %837 = vmatmul.mubr.f32.gmra.mrb[30].mxu1 %v472_v48 }
 0x101   : > { %842 = vmatprep.mubr.f32.mxu1 %v2271_v8 }
 0x104   : > { %843 = vmatmul.mubr.f32.gmra.mrb[32].mxu1 %v2606_v58  ;;  %v1182_v58 = vld [vmem:[%s2546_s10 + $0x98] sm:$0xff] }
 0x105   : > { %848 = vmatprep.mubr.f32.mxu1 %v2271_v8  ;;  %v1789_v59 = vpack.c.bf16 %v1182_v58, %v1181_v57 }
 0x107   : > { %1790 = vmatprep.subr.bf16.mxu0 %v1789_v59 }
 0x108   : > { %849 = vmatmul.mubr.f32.gmra.mrb[34].mxu1 %v2617_v2  ;;  %v1168_v2 = vld [vmem:[%s2546_s10 + $0x28] sm:$0xff] }
 0x109   : > { %854 = vmatprep.mubr.f32.mxu1 %v2271_v8  ;;  %v1795_v3 = vpack.c.bf16 %v1168_v2, %v1167_v1 }
 0x10c   : > { %855 = vmatmul.mubr.f32.gmra.mrb[36].mxu1 %v2629_v11  ;;  %v1187_v11 = vld [vmem:[%s2546_s10 + $0xc0] sm:$0xff] }
 0x10d   : > { %860 = vmatprep.mubr.f32.mxu1 %v2271_v8  ;;  %v1801_v13 = vpack.c.bf16 %v1188_v12, %v1187_v11 }
 0x110   : > { %861 = vmatmul.mubr.f32.gmra.mrb[38].mxu1 %v2641_v19  ;;  %v1805_v19 = vpack.c.bf16 %v1190_v18, %v1189_v17 }
 0x111   : > { %866 = vmatprep.mubr.f32.mxu1 %v2271_v8 }
 0x114   : > { %867 = vmatmul.mubr.f32.gmra.mrb[40].mxu1 %v2651_v27  ;;  %v1176_v27 = vld [vmem:[%s2546_s10 + $0x68] sm:$0xff] }
 0x115   : > { %872 = vmatprep.mubr.f32.mxu1 %v2271_v8  ;;  %v1811_v28 = vpack.c.bf16 %v1176_v27, %v1175_v26 }
 0x118   : > { %873 = vmatmul.mubr.f32.gmra.mrb[42].mxu1 %v478_v35  ;;  %v515_v35 = vlaneseq }
 0x119   : > { %878 = vmatprep.mubr.f32.mxu1 %v2271_v8 }
 0x11a   : > { %v2728_v36 = vshrl.u32 %v515_v35, 7 }
 0x11c   : > { %879 = vmatmul.mubr.f32.gmra.mrb[44].mxu1 %v479_v43  ;;  %v517_v37 = vsub.s32 0, %v2728_v36  ;;  %v521_v39 = vsub.s32 1, %v2728_v36 }
 0x11d   : > { %884 = vmatprep.mubr.f32.mxu1 %v2271_v8  ;;  %v1165_v8 = vld [vmem:[%s2546_s10 + $0x10] sm:$0xff] }
 0x11e   : > { %v1791_v61 = vpack.c.bf16 %v1166_v60, %v1165_v8  ;;  %v2739_v40 = vrot.slane %v513_v38, %v517_v37  ;;  %v2743_v41 = vrot.slane %v513_v38, %v521_v39 }
 0x120   : > { %885 = vmatmul.mubr.f32.gmra.mrb[46].mxu1 %v480_v49  ;;  %1792 = vmatpush3.bf16.msra.mxu0 %v1791_v61 }
 0x121   : > { %1794 = vmatprep.subr.bf16.mxu0 %v1793_v0 }
 0x124   : > { %1796 = vmatpush3.bf16.msra.mxu0 %v1795_v3 }
 0x125   : > { %1798 = vmatprep.subr.bf16.mxu0 %v1797_v6 }
 0x128   : > { %1800 = vmatpush3.bf16.msra.mxu0 %v1799_v10 }
 0x129   : > { %1802 = vmatprep.subr.bf16.mxu0 %v1801_v13 }
 0x12c   : > { %1804 = vmatpush3.bf16.msra.mxu0 %v1803_v16 }
 0x12d   : > { %1806 = vmatprep.subr.bf16.mxu0 %v1805_v19 }
 0x130   : > { %1808 = vmatpush3.bf16.msra.mxu0 %v1807_v22 }
 0x131   : > { %1810 = vmatprep.subr.bf16.mxu0 %v1809_v25 }
 0x134   : > { %1812 = vmatpush3.bf16.msra.mxu0 %v1811_v28 }
 0x135   : > { %1814 = vmatprep.subr.bf16.mxu0 %v1813_v31 }
 0x138   : > { %1816 = vmatpush3.bf16.msra.mxu0 %v1815_v34 }
 0x197   : > { %v591_v42 = vpop.f32.mrb[0].mxu0  ;;  %v639_v43 = vpop.f32.mrb[0].mxu1 }
 0x198   : > { %v2746_v44 = vadd.f32 %v591_v42, %v2739_v40  ;;  %v593_v45 = vpop.f32.mrb[1].mxu0  ;;  %v641_v46 = vpop.f32.mrb[1].mxu1  ;;  %v2768_v63 = vadd.f32 %v639_v43, %v2739_v40 }
 0x199   : > { %v2749_v47 = vadd.f32 %v593_v45, %v2743_v41  ;;  %v2774_v1 = vadd.f32 %v641_v46, %v2743_v41 }
 0x19a   : > { %v1600_v48 = vmul.f32 -1.442695, %v2746_v44  ;;  %v1616_v11 = vmul.f32 -1.442695, %v2768_v63 }
 0x19b   : > { %v1601_v49 = vmul.f32 -1.442695, %v2749_v47  ;;  %v597_v50 = vpop.f32.mrb[2].mxu0  ;;  %v645_v51 = vpop.f32.mrb[2].mxu1  ;;  %v1617_v15 = vmul.f32 -1.442695, %v2774_v1 }
 0x19c   : > { %1925 = vpow2.f32 %v1600_v48  ;;  %v2754_v52 = vadd.f32 %v597_v50, %v2739_v40  ;;  %v599_v53 = vpop.f32.mrb[3].mxu0  ;;  %v647_v54 = vpop.f32.mrb[3].mxu1  ;;  %v2786_v12 = vadd.f32 %v645_v51, %v2739_v40 }
 0x19d   : > { %v2757_v55 = vadd.f32 %v599_v53, %v2743_v41  ;;  %1927 = vpow2.f32 %v1601_v49  ;;  %v2793_v16 = vadd.f32 %v647_v54, %v2743_v41 }
 0x19e   : > { %v1602_v56 = vmul.f32 -1.442695, %v2754_v52  ;;  %v1618_v24 = vmul.f32 -1.442695, %v2786_v12 }
 0x19f   : > { %v1603_v57 = vmul.f32 -1.442695, %v2757_v55  ;;  %v603_v58 = vpop.f32.mrb[4].mxu0  ;;  %v651_v59 = vpop.f32.mrb[4].mxu1  ;;  %v1619_v28 = vmul.f32 -1.442695, %v2793_v16 }
 0x1a0   : > { %1929 = vpow2.f32 %v1602_v56  ;;  %v2762_v8 = vadd.f32 %v603_v58, %v2739_v40  ;;  %v2765_v60 = vadd.f32 %v651_v59, %v2739_v40  ;;  %v605_v61 = vpop.f32.mrb[5].mxu0  ;;  %v653_v62 = vpop.f32.mrb[5].mxu1 }
 0x1a1   : > { %v2771_v0 = vadd.f32 %v605_v61, %v2743_v41  ;;  %1931 = vpow2.f32 %v1603_v57  ;;  %v2802_v29 = vadd.f32 %v653_v62, %v2743_v41 }
 0x1a2   : > { %v1604_v2 = vmul.f32 -1.442695, %v2762_v8  ;;  %v1620_v42 = vmul.f32 -1.442695, %v2765_v60 }
 0x1a3   : > { %v1605_v3 = vmul.f32 -1.442695, %v2771_v0  ;;  %v609_v4 = vpop.f32.mrb[6].mxu0  ;;  %v657_v5 = vpop.f32.mrb[6].mxu1  ;;  %v1621_v48 = vmul.f32 -1.442695, %v2802_v29 }
 0x1a4   : > { %1933 = vpow2.f32 %v1604_v2  ;;  %v2779_v6 = vadd.f32 %v609_v4, %v2739_v40  ;;  %v2782_v7 = vadd.f32 %v657_v5, %v2739_v40  ;;  %v611_v9 = vpop.f32.mrb[7].mxu0  ;;  %v659_v10 = vpop.f32.mrb[7].mxu1  ;;  %v718_v2 = vld [vmem:[%s441_s15] sm:$0x3] }
 0x1a5   : > { %v2789_v13 = vadd.f32 %v659_v10, %v2743_v41  ;;  %1935 = vpow2.f32 %v1605_v3  ;;  %v2816_v51 = vadd.f32 %v611_v9, %v2743_v41 }
 0x1a6   : > { %v1926_v14 = vpop.eup %1925  ;;  %v1606_v17 = vmul.f32 -1.442695, %v2779_v6 }
 0x1a7   : > { %v987_v18 = vadd.f32 1.0, %v1926_v14  ;;  %v615_v19 = vpop.f32.mrb[8].mxu0  ;;  %v1928_v20 = vpop.eup %1927  ;;  %v1607_v10 = vmul.f32 -1.442695, %v2816_v51 }
 0x1a8   : > { %1937 = vpow2.f32 %v1606_v17  ;;  %v663_v21 = vpop.f32.mrb[8].mxu1  ;;  %v617_v22 = vpop.f32.mrb[9].mxu0  ;;  %v988_v23 = vadd.f32 1.0, %v1928_v20  ;;  %v2821_v59 = vadd.f32 %v615_v19, %v2739_v40  ;;  %v2847_v20 = vrot.slane %v718_v2, %v517_v37 }
 0x1a9   : > { %1939 = vpow2.f32 %v1616_v11  ;;  %v2798_v25 = vadd.f32 %v663_v21, %v2739_v40  ;;  %v665_v26 = vpop.f32.mrb[9].mxu1  ;;  %v2836_v11 = vadd.f32 %v617_v22, %v2743_v41 }
 0x1aa   : > { %v1930_v27 = vpop.eup %1929  ;;  %1941 = vpow2.f32 %v1617_v15  ;;  %v2805_v30 = vadd.f32 %v665_v26, %v2743_v41  ;;  %v2855_v26 = vrot.slane %v718_v2, %v521_v39 }
 0x1ab   : > { %1943 = vrcp.f32 %v987_v18  ;;  %v989_v31 = vadd.f32 1.0, %v1930_v27  ;;  %v621_v32 = vpop.f32.mrb[10].mxu0  ;;  %v1932_v33 = vpop.eup %1931  ;;  %v1609_v37 = vmul.f32 -1.442695, %v2836_v11 }
 0x1ac   : > { %1945 = vrcp.f32 %v988_v23  ;;  %v669_v34 = vpop.f32.mrb[10].mxu1  ;;  %v623_v35 = vpop.f32.mrb[11].mxu0  ;;  %v990_v38 = vadd.f32 1.0, %v1932_v33  ;;  %v2841_v17 = vadd.f32 %v621_v32, %v2739_v40  ;;  %v1608_v23 = vmul.f32 -1.442695, %v2821_v59 }
 0x1ad   : > { %1947 = vpow2.f32 %v1618_v24  ;;  %v2809_v43 = vadd.f32 %v669_v34, %v2739_v40  ;;  %v671_v45 = vpop.f32.mrb[11].mxu1  ;;  %v2862_v33 = vadd.f32 %v623_v35, %v2743_v41 }
 0x1ae   : > { %v1934_v46 = vpop.eup %1933  ;;  %1949 = vpow2.f32 %v1619_v28  ;;  %v2813_v49 = vadd.f32 %v671_v45, %v2743_v41  ;;  %v1610_v39 = vmul.f32 -1.442695, %v2841_v17 }
 0x1af   : > { %1951 = vrcp.f32 %v989_v31  ;;  %v991_v50 = vadd.f32 1.0, %v1934_v46  ;;  %v627_v53 = vpop.f32.mrb[12].mxu0  ;;  %v1936_v54 = vpop.eup %1935  ;;  %v1611_v2 = vmul.f32 -1.442695, %v2862_v33 }
 0x1b0   : > { %1953 = vrcp.f32 %v990_v38  ;;  %v675_v56 = vpop.f32.mrb[12].mxu1  ;;  %v2818_v57 = vpop.f32.mrb[13].mxu0  ;;  %v992_v58 = vadd.f32 1.0, %v1936_v54  ;;  %v2869_v54 = vadd.f32 %v627_v53, %v2739_v40 }
 0x1b1   : > { %1955 = vpow2.f32 %v1620_v42  ;;  %v2824_v61 = vadd.f32 %v675_v56, %v2739_v40  ;;  %v677_v62 = vpop.f32.mrb[13].mxu1 }
 0x1b2   : > { %v1938_v3 = vpop.eup %1937  ;;  %1957 = vpow2.f32 %v1621_v48  ;;  %v2832_v4 = vadd.f32 %v677_v62, %v2743_v41 }
 0x1b3   : > { %v1940_v5 = vpop.eup %1939  ;;  %1959 = vrcp.f32 %v991_v50  ;;  %v993_v9 = vadd.f32 1.0, %v1938_v3  ;;  %v2838_v14 = vpop.f32.mrb[14].mxu0 }
 0x1b4   : > { %v1942_v15 = vpop.eup %1941  ;;  %1961 = vrcp.f32 %v992_v58  ;;  %v681_v18 = vpop.f32.mrb[14].mxu1  ;;  %v1003_v28 = vadd.f32 1.0, %v1940_v5 }
 0x1b5   : > { %v2843_v19 = vpop.f32.mrb[15].mxu0  ;;  %v1944_v21 = vpop.eup %1943  ;;  %v2851_v22 = vadd.f32 %v681_v18, %v2739_v40  ;;  %1963 = vrcp.f32 %v993_v9  ;;  %v1004_v36 = vadd.f32 1.0, %v1942_v15 }
 0x1b6   : > { %v683_v24 = vpop.f32.mrb[15].mxu1  ;;  %v1946_v27 = vpop.eup %1945  ;;  %1965 = vpow2.f32 %v1607_v10  ;;  %v1083_v42 = vmul.f32 %v1944_v21, %v2746_v44 }
 0x1b7   : > { %v2858_v31 = vadd.f32 %v683_v24, %v2743_v41  ;;  %v1948_v32 = vpop.eup %1947  ;;  %v796_v34 = vpop.f32.mrb[16].mxu1  ;;  %v1084_v50 = vmul.f32 %v1946_v27, %v2749_v47  ;;  %1967 = vpow2.f32 %v1608_v23  ;;  %v1612_v23 = vmul.f32 -1.442695, %v2869_v54 }
 0x1b8   : > { %v1950_v38 = vpop.eup %1949  ;;  %v797_v45 = vadd.f32 %v796_v34, %v2847_v20  ;;  %v798_v46 = vpop.f32.mrb[17].mxu1  ;;  %1969 = vrcp.f32 %v1003_v28  ;;  %v1005_v58 = vadd.f32 1.0, %v1948_v32 }
 0x1b9   : > { %v1952_v48 = vpop.eup %1951  ;;  %v799_v35 = vadd.f32 %v798_v46, %v2855_v26  ;;  %1971 = vpow2.f32 %v1609_v37  ;;  %v1006_v10 = vadd.f32 1.0, %v1950_v38 }
 0x1ba   : > { %v1954_v56 = vpop.eup %1953  ;;  %v1115_v62 = vmul.f32 %v1083_v42, %v797_v45  ;;  %1973 = vrcp.f32 %v1004_v36  ;;  %v1085_v47 = vmul.f32 %v1952_v48, %v2754_v52  ;;  %v1622_v52 = vmul.f32 -1.442695, %v2782_v7 }
 0x1bb   : > { %v1956_v44 = vpop.eup %1955  ;;  %v1116_v3 = vmul.f32 %v1084_v50, %v799_v35  ;;  %v802_v5 = vpop.f32.mrb[18].mxu1  ;;  %v1086_v21 = vmul.f32 %v1954_v56, %v2757_v55  ;;  %1975 = vpow2.f32 %v1610_v39 }
 0x1bc   : > { %v1958_v9 = vpop.eup %1957  ;;  %v803_v53 = vadd.f32 %v802_v5, %v2847_v20  ;;  %v804_v15 = vpop.f32.mrb[19].mxu1  ;;  %1977 = vrcp.f32 %v1005_v58  ;;  %v1007_v28 = vadd.f32 1.0, %v1956_v44  ;;  %v1623_v58 = vmul.f32 -1.442695, %v2789_v13 }
 0x1bd   : > { %v1960_v18 = vpop.eup %1959  ;;  %v805_v24 = vadd.f32 %v804_v15, %v2855_v26  ;;  %1259 = vmatprep.mubr.f32.mxu0 %v1116_v3  ;;  %1979 = vpow2.f32 %v1611_v2  ;;  %v1008_v46 = vadd.f32 1.0, %v1958_v9 }
 0x1be   : > { %v1962_v27 = vpop.eup %1961  ;;  %v1117_v32 = vmul.f32 %v1085_v47, %v803_v53  ;;  %1260 = vmatmul.mubr.f32.vlgmr.msra.gmra.mrb[16].mxu0 %v1115_v62  ;;  %1981 = vrcp.f32 %v1006_v10  ;;  %v1087_v55 = vmul.f32 %v1960_v18, %v2762_v8  ;;  %v1624_v47 = vmul.f32 -1.442695, %v2798_v25 }
 0x1bf   : > { %v1118_v37 = vmul.f32 %v1086_v21, %v805_v24  ;;  %v808_v34 = vpop.f32.mrb[20].mxu1  ;;  %v1964_v38 = vpop.eup %1963  ;;  %v1088_v45 = vmul.f32 %v1962_v27, %v2771_v0  ;;  %1983 = vpow2.f32 %v1612_v23  ;;  %v2898_v27 = vadd.f32 %v2818_v57, %v2743_v41 }
 0x1c0   : > { %v809_v42 = vadd.f32 %v808_v34, %v2847_v20  ;;  %v810_v36 = vpop.f32.mrb[21].mxu1  ;;  %v1966_v39 = vpop.eup %1965  ;;  %1985 = vrcp.f32 %v1007_v28  ;;  %v1089_v2 = vmul.f32 %v1964_v38, %v2779_v6  ;;  %v1625_v6 = vmul.f32 -1.442695, %v2805_v30 }
 0x1c1   : > { %v811_v48 = vadd.f32 %v810_v36, %v2855_v26  ;;  %1264 = vmatprep.mubr.f32.mxu0 %v1118_v37  ;;  %v994_v50 = vadd.f32 1.0, %v1966_v39  ;;  %v1968_v56 = vpop.eup %1967  ;;  %1987 = vpow2.f32 %v1622_v52  ;;  %v1626_v52 = vmul.f32 -1.442695, %v2809_v43 }
 0x1c2   : > { %v1119_v35 = vmul.f32 %v1087_v55, %v809_v42  ;;  %1265 = vmatmul.mubr.f32.gmra.mrb[18].mxu0 %v1117_v32  ;;  %v2884_v44 = vpop.eup %1969  ;;  %v995_v0 = vadd.f32 1.0, %v1968_v56  ;;  %v2905_v38 = vadd.f32 %v2838_v14, %v2739_v40  ;;  %v1627_v42 = vmul.f32 -1.442695, %v2813_v49 }
 0x1c3   : > { %v1120_v8 = vmul.f32 %v1088_v45, %v811_v48  ;;  %v814_v62 = vpop.f32.mrb[22].mxu1  ;;  %1989 = vrcp.f32 %v994_v50  ;;  %v1972_v9 = vpop.eup %1971  ;;  %v1613_v45 = vmul.f32 -1.442695, %v2898_v27  ;;  %v1628_v40 = vmul.f32 -1.442695, %v2824_v61 }
 0x1c4   : > { %v815_v3 = vadd.f32 %v814_v62, %v2847_v20  ;;  %v816_v5 = vpop.f32.mrb[23].mxu1  ;;  %1991 = vrcp.f32 %v1008_v46  ;;  %v2889_v10 = vpop.eup %1973  ;;  %v996_v53 = vadd.f32 1.0, %v1972_v9  ;;  %v2913_v46 = vadd.f32 %v2843_v19, %v2743_v41 }
 0x1c5   : > { %1269 = vmatprep.mubr.f32.mxu0 %v1120_v8  ;;  %1993 = vrcp.f32 %v995_v0  ;;  %v1976_v18 = vpop.eup %1975  ;;  %v817_v14 = vadd.f32 %v816_v5, %v2855_v26  ;;  %v1614_v56 = vmul.f32 -1.442695, %v2905_v38  ;;  %v1629_v62 = vmul.f32 -1.442695, %v2832_v4 }
 0x1c6   : > { %v2891_v15 = vmul.f32 %v1089_v2, %v815_v3  ;;  %1270 = vmatmul.mubr.f32.gmra.mrb[20].mxu0 %v1119_v35  ;;  %1995 = vpow2.f32 %v1623_v58  ;;  %v2894_v23 = vpop.eup %1977  ;;  %v997_v24 = vadd.f32 1.0, %v1976_v18  ;;  %v1615_v3 = vmul.f32 -1.442695, %v2913_v46 }
 0x1c7   : > { %v820_v21 = vpop.f32.mrb[24].mxu1  ;;  %1997 = vrcp.f32 %v996_v53  ;;  %v1980_v32 = vpop.eup %1979 }
 0x1c8   : > { %v822_v28 = vpop.f32.mrb[25].mxu1  ;;  %1999 = vpow2.f32 %v1624_v47  ;;  %v2901_v37 = vpop.eup %1981  ;;  %v998_v34 = vadd.f32 1.0, %v1980_v32  ;;  %v821_v41 = vadd.f32 %v820_v21, %v2847_v20  ;;  %v1631_v21 = vmul.f32 -1.442695, %v2858_v31 }
 0x1c9   : > { %2001 = vrcp.f32 %v997_v24  ;;  %v1984_v55 = vpop.eup %1983 }
 0x1ca   : > { %2003 = vpow2.f32 %v1625_v6  ;;  %v2908_v57 = vpop.eup %1985  ;;  %v999_v39 = vadd.f32 1.0, %v1984_v55  ;;  %v1630_v6 = vmul.f32 -1.442695, %v2851_v22 }
 0x1cb   : > { %v826_v36 = vpop.f32.mrb[26].mxu1  ;;  %2005 = vrcp.f32 %v998_v34  ;;  %v1988_v50 = vpop.eup %1987 }
 0x1cc   : > { %v828_v48 = vpop.f32.mrb[27].mxu1  ;;  %2007 = vpow2.f32 %v1626_v52  ;;  %v1009_v0 = vadd.f32 1.0, %v1988_v50  ;;  %v827_v34 = vadd.f32 %v826_v36, %v2847_v20 }
 0x1cd   : > { %v1990_v35 = vpop.eup %1989  ;;  %2009 = vrcp.f32 %v999_v39 }
 0x1ce   : > { %v2918_v58 = vpop.eup %1991  ;;  %v1090_v8 = vmul.f32 %v1990_v35, %v2816_v51  ;;  %2011 = vpow2.f32 %v1627_v42  ;;  %v823_v51 = vadd.f32 %v822_v28, %v2855_v26 }
 0x1cf   : > { %v832_v19 = vpop.f32.mrb[28].mxu1  ;;  %v1994_v2 = vpop.eup %1993  ;;  %2013 = vpow2.f32 %v1613_v45 }
 0x1d0   : > { %v2924_v5 = vpop.f32.mrb[29].mxu1  ;;  %v1996_v9 = vpop.eup %1995  ;;  %v1091_v47 = vmul.f32 %v1994_v2, %v2821_v59  ;;  %2015 = vpow2.f32 %v1628_v40  ;;  %v1122_v53 = vmul.f32 %v1090_v8, %v817_v14 }
 0x1d1   : > { %v1998_v18 = vpop.eup %1997  ;;  %2017 = vpow2.f32 %v1614_v56  ;;  %v1010_v42 = vadd.f32 1.0, %v1996_v9 }
 0x1d2   : > { %v2000_v24 = vpop.eup %1999  ;;  %v1092_v32 = vmul.f32 %v1998_v18, %v2836_v11  ;;  %2019 = vpow2.f32 %v1629_v62  ;;  %v1123_v52 = vmul.f32 %v1091_v47, %v821_v41  ;;  %1274 = vmatprep.mubr.f32.mxu0 %v1122_v53  ;;  %v829_v11 = vadd.f32 %v828_v48, %v2855_v26 }
 0x1d3   : > { %v2932_v55 = vpop.f32.mrb[30].mxu1  ;;  %v2002_v59 = vpop.eup %2001  ;;  %2021 = vpow2.f32 %v1615_v3  ;;  %1275 = vmatmul.mubr.f32.gmra.mrb[22].mxu0 %v2891_v15  ;;  %v1011_v14 = vadd.f32 1.0, %v2000_v24  ;;  %v833_v15 = vadd.f32 %v832_v19, %v2847_v20  ;;  %v1099_v41 = vmul.f32 %v2884_v44, %v2768_v63 }
 0x1d4   : > { %v2935_v28 = vpop.f32.mrb[31].mxu1  ;;  %v2004_v39 = vpop.eup %2003  ;;  %2023 = vrcp.f32 %v1009_v0  ;;  %v1093_v45 = vmul.f32 %v2002_v59, %v2841_v17  ;;  %v1124_v50 = vmul.f32 %v1092_v32, %v823_v51 }
 0x1d5   : > { %v2006_v40 = vpop.eup %2005  ;;  %2025 = vpow2.f32 %v1630_v6  ;;  %v1012_v17 = vadd.f32 1.0, %v2004_v39 }
 0x1d6   : > { %v2008_v36 = vpop.eup %2007  ;;  %v1094_v35 = vmul.f32 %v2006_v40, %v2862_v33  ;;  %2027 = vpow2.f32 %v1631_v21  ;;  %v1125_v56 = vmul.f32 %v1093_v45, %v827_v34  ;;  %1279 = vmatprep.mubr.f32.mxu0 %v1124_v50  ;;  %v1100_v33 = vmul.f32 %v2889_v10, %v2774_v1 }
 0x1d7   : > { %v844_v8 = vpop.f32.mrb[32].mxu1  ;;  %v2010_v62 = vpop.eup %2009  ;;  %2029 = vrcp.f32 %v1010_v42  ;;  %1280 = vmatmul.mubr.f32.gmra.mrb[24].mxu0 %v1123_v52  ;;  %v1013_v53 = vadd.f32 1.0, %v2008_v36  ;;  %v1101_v1 = vmul.f32 %v2894_v23, %v2786_v12  ;;  %v1102_v34 = vmul.f32 %v2901_v37, %v2793_v16 }
 0x1d8   : > { %v845_v48 = vadd.f32 %v844_v8, %v2847_v20  ;;  %v846_v2 = vpop.f32.mrb[33].mxu1  ;;  %v2012_v0 = vpop.eup %2011  ;;  %v1095_v3 = vmul.f32 %v2010_v62, %v2869_v54  ;;  %v1126_v9 = vmul.f32 %v1094_v35, %v829_v11  ;;  %2031 = vrcp.f32 %v1011_v14 }
 0x1d9   : > { %v847_v19 = vadd.f32 %v846_v2, %v2855_v26  ;;  %v2014_v47 = vpop.eup %2013  ;;  %2033 = vrcp.f32 %v1012_v17  ;;  %v1014_v54 = vadd.f32 1.0, %v2012_v0  ;;  %v1103_v36 = vmul.f32 %v2908_v57, %v2765_v60 }
 0x1da   : > { %v2948_v51 = vmul.f32 %v1099_v41, %v845_v48  ;;  %v2016_v63 = vpop.eup %2015  ;;  %v1000_v44 = vadd.f32 1.0, %v2014_v47  ;;  %v2950_v18 = vmul.f32 %v1095_v3, %v833_v15  ;;  %1284 = vmatprep.mubr.f32.mxu0 %v1126_v9  ;;  %v1104_v15 = vmul.f32 %v2918_v58, %v2802_v29 }
 0x1db   : > { %v2952_v6 = vmul.f32 %v1100_v33, %v847_v19  ;;  %v850_v21 = vpop.f32.mrb[34].mxu1  ;;  %v2018_v24 = vpop.eup %2017  ;;  %1285 = vmatmul.mubr.f32.gmra.mrb[26].mxu0 %v1125_v56  ;;  %v1015_v12 = vadd.f32 1.0, %v2016_v63  ;;  %v835_v19 = vadd.f32 %v2924_v5, %v2855_v26 }
 0x1dc   : > { %v851_v10 = vadd.f32 %v850_v21, %v2847_v20  ;;  %v852_v32 = vpop.f32.mrb[35].mxu1  ;;  %v2020_v52 = vpop.eup %2019  ;;  %2035 = vrcp.f32 %v1000_v44  ;;  %v1001_v59 = vadd.f32 1.0, %v2018_v24 }
 0x1dd   : > { %v853_v42 = vadd.f32 %v852_v32, %v2855_v26  ;;  %v2022_v39 = vpop.eup %2021  ;;  %2037 = vrcp.f32 %v1013_v53  ;;  %v1016_v16 = vadd.f32 1.0, %v2020_v52 }
 0x1de   : > { %v2960_v45 = vmul.f32 %v1101_v1, %v851_v10  ;;  %v2024_v50 = vpop.eup %2023  ;;  %2039 = vrcp.f32 %v1001_v59  ;;  %v1002_v23 = vadd.f32 1.0, %v2022_v39  ;;  %v841_v59 = vadd.f32 %v2935_v28, %v2855_v26 }
 0x1df   : > { %v2962_v11 = vmul.f32 %v1102_v34, %v853_v42  ;;  %v856_v40 = vpop.f32.mrb[36].mxu1  ;;  %v2026_v14 = vpop.eup %2025  ;;  %2041 = vrcp.f32 %v1014_v54  ;;  %v1105_v2 = vmul.f32 %v2024_v50, %v2782_v7 }
 0x1e0   : > { %v857_v37 = vadd.f32 %v856_v40, %v2847_v20  ;;  %v858_v35 = vpop.f32.mrb[37].mxu1  ;;  %v2028_v56 = vpop.eup %2027  ;;  %2043 = vrcp.f32 %v1002_v23  ;;  %v1017_v17 = vadd.f32 1.0, %v2026_v14 }
 0x1e1   : > { %v859_v8 = vadd.f32 %v858_v35, %v2855_v26  ;;  %v2030_v62 = vpop.eup %2029  ;;  %2045 = vrcp.f32 %v1015_v12  ;;  %v1018_v0 = vadd.f32 1.0, %v2028_v56 }
 0x1e2   : > { %v2970_v41 = vmul.f32 %v1103_v36, %v857_v37  ;;  %v2032_v57 = vpop.eup %2031  ;;  %2047 = vrcp.f32 %v1016_v16  ;;  %v1106_v29 = vmul.f32 %v2030_v62, %v2789_v13  ;;  %v839_v13 = vadd.f32 %v2932_v55, %v2847_v20 }
 0x1e3   : > { %v2972_v48 = vmul.f32 %v1104_v15, %v859_v8  ;;  %v862_v60 = vpop.f32.mrb[38].mxu1  ;;  %v2034_v9 = vpop.eup %2033  ;;  %v1107_v63 = vmul.f32 %v2032_v57, %v2798_v25  ;;  %2049 = vrcp.f32 %v1017_v17 }
 0x1e4   : > { %v863_v33 = vadd.f32 %v862_v60, %v2847_v20  ;;  %v864_v3 = vpop.f32.mrb[39].mxu1  ;;  %2051 = vrcp.f32 %v1018_v0  ;;  %v1108_v5 = vmul.f32 %v2034_v9, %v2805_v30  ;;  %v1149_v9 = vld [vmem:[#allocation2 + $0x10] sm:$0xff] }
 0x1e5   : > { %v865_v58 = vadd.f32 %v864_v3, %v2855_v26 }
 0x1e6   : > { %v2980_v47 = vmul.f32 %v1105_v2, %v863_v33  ;;  %v2036_v53 = vpop.eup %2035 }
 0x1e7   : > { %v1138_v7 = vmul.f32 %v1106_v29, %v865_v58  ;;  %v868_v44 = vpop.f32.mrb[40].mxu1  ;;  %v2038_v21 = vpop.eup %2037  ;;  %v1096_v24 = vmul.f32 %v2036_v53, %v2898_v27 }
 0x1e8   : > { %v869_v1 = vadd.f32 %v868_v44, %v2847_v20  ;;  %v870_v54 = vpop.f32.mrb[41].mxu1  ;;  %v2040_v10 = vpop.eup %2039  ;;  %v1109_v55 = vmul.f32 %v2038_v21, %v2809_v43 }
 0x1e9   : > { %v871_v32 = vadd.f32 %v870_v54, %v2855_v26  ;;  %v2042_v52 = vpop.eup %2041  ;;  %v1097_v25 = vmul.f32 %v2040_v10, %v2905_v38  ;;  %v1128_v34 = vmul.f32 %v1096_v24, %v835_v19 }
 0x1ea   : > { %v1139_v27 = vmul.f32 %v1107_v63, %v869_v1  ;;  %v2044_v42 = vpop.eup %2043  ;;  %v1110_v38 = vmul.f32 %v2042_v52, %v2813_v49  ;;  %v1151_v1 = vld [vmem:[#allocation2 + $0x20] sm:$0xff]  ;;  %v1152_v52 = vld [vmem:[#allocation2 + $0x28] sm:$0xff] }
 0x1eb   : > { %v1140_v39 = vmul.f32 %v1108_v5, %v871_v32  ;;  %v874_v50 = vpop.f32.mrb[42].mxu1  ;;  %v1098_v12 = vmul.f32 %v2044_v42, %v2913_v46  ;;  %v1129_v23 = vmul.f32 %v1097_v25, %v839_v13  ;;  %1289 = vmatprep.mubr.f32.mxu0 %v1128_v34  ;;  %v2046_v14 = vpop.eup %2045  ;;  %v1153_v42 = vld [vmem:[#allocation2 + $0x30] sm:$0xff] }
 0x1ec   : > { %v875_v30 = vadd.f32 %v874_v50, %v2847_v20  ;;  %v876_v40 = vpop.f32.mrb[43].mxu1  ;;  %1290 = vmatmul.mubr.f32.gmra.mrb[28].mxu0 %v2950_v18  ;;  %v2048_v36 = vpop.eup %2047  ;;  %v1111_v43 = vmul.f32 %v2046_v14, %v2824_v61 }
 0x1ed   : > { %v877_v28 = vadd.f32 %v876_v40, %v2855_v26  ;;  %v1130_v16 = vmul.f32 %v1098_v12, %v841_v59  ;;  %v2050_v8 = vpop.eup %2049  ;;  %v1112_v62 = vmul.f32 %v2048_v36, %v2832_v4 }
 0x1ee   : > { %v1141_v37 = vmul.f32 %v1109_v55, %v875_v30  ;;  %v2052_v18 = vpop.eup %2051  ;;  %v1113_v2 = vmul.f32 %v2050_v8, %v2851_v22  ;;  %v1147_v22 = vld [vmem:[#allocation2] sm:$0xff] }
 0x1ef   : > { %v1142_v35 = vmul.f32 %v1110_v38, %v877_v28  ;;  %v880_v56 = vpop.f32.mrb[44].mxu1  ;;  %1294 = vmatprep.mubr.f32.mxu0 %v1130_v16  ;;  %v1114_v33 = vmul.f32 %v2052_v18, %v2858_v31  ;;  %v1155_v28 = vld [vmem:[#allocation2 + $0x40] sm:$0xff] }
 0x1f0   : > { %v881_v46 = vadd.f32 %v880_v56, %v2847_v20  ;;  %v882_v15 = vpop.f32.mrb[45].mxu1  ;;  %1295 = vmatmul.mubr.f32.gmra.mrb[30].mxu0 %v1129_v23  ;;  %v1154_v23 = vld [vmem:[#allocation2 + $0x38] sm:$0xff]  ;;  %v1156_v56 = vld [vmem:[#allocation2 + $0x48] sm:$0xff] }
 0x1f1   : > { %v883_v49 = vadd.f32 %v882_v15, %v2855_v26  ;;  %1299 = vmatprep.mubr.f32.mxu0 %v2952_v6 }
 0x1f2   : > { %v1143_v17 = vmul.f32 %v1111_v43, %v881_v46 }
 0x1f3   : > { %v1144_v60 = vmul.f32 %v1112_v62, %v883_v49  ;;  %v886_v57 = vpop.f32.mrb[46].mxu1  ;;  %v1157_v62 = vld [vmem:[#allocation2 + $0x50] sm:$0xff] }
 0x1f4   : > { %v887_v61 = vadd.f32 %v886_v57, %v2847_v20  ;;  %v888_v0 = vpop.f32.mrb[47].mxu1  ;;  %1300 = vmatmul.mubr.f32.gmra.mrb[32].mxu0 %v2948_v51  ;;  %v1158_v57 = vld [vmem:[#allocation2 + $0x58] sm:$0xff] }
 0x1f5   : > { %v889_v4 = vadd.f32 %v888_v0, %v2855_v26  ;;  %1304 = vmatprep.mubr.f32.mxu0 %v2962_v11 }
 0x1f6   : > { %v1145_v3 = vmul.f32 %v1113_v2, %v887_v61 }
 0x1f7   : > { %v1146_v29 = vmul.f32 %v1114_v33, %v889_v4  ;;  %v1159_v4 = vld [vmem:[#allocation2 + $0x60] sm:$0xff] }
 0x1f8   : > { %1305 = vmatmul.mubr.f32.gmra.mrb[34].mxu0 %v2960_v45  ;;  %v1148_v45 = vld [vmem:[#allocation2 + $0x8] sm:$0xff] }
 0x1f9   : > { %1309 = vmatprep.mubr.f32.mxu0 %v2972_v48 }
 0x1fc   : > { %1310 = vmatmul.mubr.f32.gmra.mrb[36].mxu0 %v2970_v41 }
 0x1fd   : > { %1314 = vmatprep.mubr.f32.mxu0 %v1138_v7  ;;  %v1150_v7 = vld [vmem:[#allocation2 + $0x18] sm:$0xff] }
 0x200   : > { %1315 = vmatmul.mubr.f32.gmra.mrb[38].mxu0 %v2980_v47 }
 0x201   : > { %1319 = vmatprep.mubr.f32.mxu0 %v1140_v39 }
 0x204   : > { %1320 = vmatmul.mubr.f32.gmra.mrb[40].mxu0 %v1139_v27 }
 0x205   : > { %1324 = vmatprep.mubr.f32.mxu0 %v1142_v35 }
 0x208   : > { %1325 = vmatmul.mubr.f32.gmra.mrb[42].mxu0 %v1141_v37 }
 0x209   : > { %1329 = vmatprep.mubr.f32.mxu0 %v1144_v60 }
 0x20c   : > { %1330 = vmatmul.mubr.f32.gmra.mrb[44].mxu0 %v1143_v17 }
 0x20d   : > { %1334 = vmatprep.mubr.f32.mxu0 %v1146_v29 }
 0x210   : > { %1335 = vmatmul.mubr.f32.gmra.mrb[46].mxu0 %v1145_v3 }
 0x291   : > { %v1673_v20 = vpop.f32.mrb[16].mxu0 }
 0x292   : > { %v1674_v26 = vpop.f32.mrb[17].mxu0 }
 0x293   : > { %v1675_v31 = vadd.f32 %v1674_v26, %v1673_v20  ;;  %v1160_v26 = vld [vmem:[#allocation2 + $0x68] sm:$0xff] }
 0x295   : > { %v1340_v51 = vadd.f32 %v1675_v31, %v1147_v22  ;;  %v1676_v6 = vpop.f32.mrb[18].mxu0 }
 0x296   : > { %v1677_v11 = vpop.f32.mrb[19].mxu0 }
 0x297   : > { %1356 = vst [vmem:[#allocation2] sm:$0xff] %v1340_v51  ;;  %v1678_v41 = vadd.f32 %v1677_v11, %v1676_v6  ;;  %v1161_v11 = vld [vmem:[#allocation2 + $0x70] sm:$0xff] }
 0x299   : > { %v1341_v48 = vadd.f32 %v1678_v41, %v1148_v45  ;;  %v1679_v58 = vpop.f32.mrb[20].mxu0 }
 0x29a   : > { %v1680_v19 = vpop.f32.mrb[21].mxu0 }
 0x29b   : > { %1357 = vst [vmem:[#allocation2 + $0x8] sm:$0xff] %v1341_v48  ;;  %v1681_v47 = vadd.f32 %v1680_v19, %v1679_v58  ;;  %v1162_v19 = vld [vmem:[#allocation2 + $0x78] sm:$0xff] }
 0x29d   : > { %v1342_v53 = vadd.f32 %v1681_v47, %v1149_v9 }
 0x29f   : > { %1358 = vst [vmem:[#allocation2 + $0x10] sm:$0xff] %v1342_v53 }
 0x2a6   : > { %v1682_v63 = vpop.f32.mrb[22].mxu0 }
 0x2a7   : > { %v1683_v44 = vpop.f32.mrb[23].mxu0 }
 0x2a8   : > { %v1684_v21 = vadd.f32 %v1683_v44, %v1682_v63  ;;  %v1633_v44 = vld [vmem:[%s3064_s6] ss:$0 sm:$0xff] (!%p1632_p4) }
 0x2aa   : > { %v1343_v24 = vadd.f32 %v1684_v21, %v1150_v7  ;;  %v1685_v13 = vpop.f32.mrb[24].mxu0  ;;  %v1376_v7 = vld [vmem:[#allocation2] sm:$0xff] (!%p1632_p4)  ;;  %v1377_v21 = vld [vmem:[#allocation2 + $0x8] sm:$0xff] (!%p1632_p4) }
 0x2ab   : > { %v1686_v54 = vpop.f32.mrb[25].mxu0 }
 0x2ac   : > { %1359 = vst [vmem:[#allocation2 + $0x18] sm:$0xff] %v1343_v24  ;;  %v1687_v10 = vadd.f32 %v1686_v54, %v1685_v13  ;;  %v1399_v24 = vadd.f32 (!%p1632_p4), %v1633_v44, %v1376_v7  ;;  %v1400_v13 = vadd.f32 (!%p1632_p4), %v1633_v44, %v1377_v21 }
 0x2ae   : > { %v1344_v5 = vadd.f32 %v1687_v10, %v1151_v1  ;;  %v1688_v32 = vpop.f32.mrb[26].mxu0  ;;  %v1378_v1 = vld [vmem:[#allocation2 + $0x10] sm:$0xff] (!%p1632_p4)  ;;  %1415 = vst [vmem:[#allocation11] sm:$0xff] (!%p1632_p4), %v1399_v24  ;;  %1416 = vst [vmem:[#allocation11 + $0x8] sm:$0xff] (!%p1632_p4), %v1400_v13 }
 0x2af   : > { %v1689_v25 = vpop.f32.mrb[27].mxu0 }
 0x2b0   : > { %1360 = vst [vmem:[#allocation2 + $0x20] sm:$0xff] %v1344_v5  ;;  %v1690_v34 = vadd.f32 %v1689_v25, %v1688_v32  ;;  %v1401_v5 = vadd.f32 (!%p1632_p4), %v1633_v44, %v1378_v1 }
 0x2b2   : > { %v1345_v59 = vadd.f32 %v1690_v34, %v1152_v52  ;;  %1417 = vst [vmem:[#allocation11 + $0x10] sm:$0xff] (!%p1632_p4), %v1401_v5 }
 0x2b3   : > { %v1379_v54 = vld [vmem:[#allocation2 + $0x18] sm:$0xff] (!%p1632_p4) }
 0x2b4   : > { %1361 = vst [vmem:[#allocation2 + $0x28] sm:$0xff] %v1345_v59  ;;  %v1402_v32 = vadd.f32 (!%p1632_p4), %v1633_v44, %v1379_v54 }
 0x2b6   : > { %1418 = vst [vmem:[#allocation11 + $0x18] sm:$0xff] (!%p1632_p4), %v1402_v32 }
 0x2b7   : > { %v1380_v10 = vld [vmem:[#allocation2 + $0x20] sm:$0xff] (!%p1632_p4) }
 0x2b8   : > { %v1403_v52 = vadd.f32 (!%p1632_p4), %v1633_v44, %v1380_v10 }
 0x2ba   : > { %1419 = vst [vmem:[#allocation11 + $0x20] sm:$0xff] (!%p1632_p4), %v1403_v52 }
 0x2bb   : > { %v1381_v25 = vld [vmem:[#allocation2 + $0x28] sm:$0xff] (!%p1632_p4) }
 0x2bf   : > { %v1691_v27 = vpop.f32.mrb[28].mxu0 }
 0x2c0   : > { %v1692_v39 = vpop.f32.mrb[29].mxu0 }
 0x2c1   : > { %v1693_v50 = vadd.f32 %v1692_v39, %v1691_v27  ;;  %v1404_v27 = vadd.f32 (!%p1632_p4), %v1633_v44, %v1381_v25 }
 0x2c3   : > { %v1346_v55 = vadd.f32 %v1693_v50, %v1153_v42  ;;  %v1694_v12 = vpop.f32.mrb[30].mxu0  ;;  %1420 = vst [vmem:[#allocation11 + $0x28] sm:$0xff] (!%p1632_p4), %v1404_v27 }
 0x2c4   : > { %v1695_v30 = vpop.f32.mrb[31].mxu0 }
 0x2c5   : > { %1362 = vst [vmem:[#allocation2 + $0x30] sm:$0xff] %v1346_v55  ;;  %v1696_v40 = vadd.f32 %v1695_v30, %v1694_v12 }
 0x2c7   : > { %v1347_v14 = vadd.f32 %v1696_v40, %v1154_v23  ;;  %v1697_v38 = vpop.f32.mrb[32].mxu0 }
 0x2c8   : > { %v1698_v36 = vpop.f32.mrb[33].mxu0 }
 0x2c9   : > { %1363 = vst [vmem:[#allocation2 + $0x38] sm:$0xff] %v1347_v14  ;;  %v1699_v16 = vadd.f32 %v1698_v36, %v1697_v38 }
 0x2cb   : > { %v1348_v37 = vadd.f32 %v1699_v16, %v1155_v28  ;;  %v1700_v35 = vpop.f32.mrb[34].mxu0 }
 0x2cc   : > { %v1701_v43 = vpop.f32.mrb[35].mxu0  ;;  %v1382_v34 = vld [vmem:[#allocation2 + $0x30] sm:$0xff] (!%p1632_p4) }
 0x2cd   : > { %1364 = vst [vmem:[#allocation2 + $0x40] sm:$0xff] %v1348_v37  ;;  %v1702_v46 = vadd.f32 %v1701_v43, %v1700_v35  ;;  %v1405_v42 = vadd.f32 (!%p1632_p4), %v1633_v44, %v1382_v34 }
 0x2cf   : > { %v1349_v15 = vadd.f32 %v1702_v46, %v1156_v56  ;;  %v1703_v8 = vpop.f32.mrb[36].mxu0  ;;  %1421 = vst [vmem:[#allocation11 + $0x30] sm:$0xff] (!%p1632_p4), %v1405_v42 }
 0x2d0   : > { %v1704_v49 = vpop.f32.mrb[37].mxu0  ;;  %v1383_v59 = vld [vmem:[#allocation2 + $0x38] sm:$0xff] (!%p1632_p4) }
 0x2d1   : > { %1365 = vst [vmem:[#allocation2 + $0x48] sm:$0xff] %v1349_v15  ;;  %v1705_v18 = vadd.f32 %v1704_v49, %v1703_v8  ;;  %v1406_v39 = vadd.f32 (!%p1632_p4), %v1633_v44, %v1383_v59 }
 0x2d3   : > { %v1350_v17 = vadd.f32 %v1705_v18, %v1157_v62  ;;  %v1706_v60 = vpop.f32.mrb[38].mxu0  ;;  %1422 = vst [vmem:[#allocation11 + $0x38] sm:$0xff] (!%p1632_p4), %v1406_v39 }
 0x2d4   : > { %v1707_v2 = vpop.f32.mrb[39].mxu0  ;;  %v1384_v50 = vld [vmem:[#allocation2 + $0x40] sm:$0xff] (!%p1632_p4) }
 0x2d5   : > { %1366 = vst [vmem:[#allocation2 + $0x50] sm:$0xff] %v1350_v17  ;;  %v1708_v61 = vadd.f32 %v1707_v2, %v1706_v60  ;;  %v1407_v23 = vadd.f32 (!%p1632_p4), %v1633_v44, %v1384_v50 }
 0x2d7   : > { %v1351_v0 = vadd.f32 %v1708_v61, %v1158_v57  ;;  %v1709_v33 = vpop.f32.mrb[40].mxu0  ;;  %1423 = vst [vmem:[#allocation11 + $0x40] sm:$0xff] (!%p1632_p4), %v1407_v23 }
 0x2d8   : > { %v1710_v3 = vpop.f32.mrb[41].mxu0  ;;  %v1385_v55 = vld [vmem:[#allocation2 + $0x48] sm:$0xff] (!%p1632_p4) }
 0x2d9   : > { %1367 = vst [vmem:[#allocation2 + $0x58] sm:$0xff] %v1351_v0  ;;  %v1711_v29 = vadd.f32 %v1710_v3, %v1709_v33  ;;  %v1408_v30 = vadd.f32 (!%p1632_p4), %v1633_v44, %v1385_v55 }
 0x2db   : > { %v1352_v20 = vadd.f32 %v1711_v29, %v1159_v4  ;;  %v1712_v22 = vpop.f32.mrb[42].mxu0  ;;  %1424 = vst [vmem:[#allocation11 + $0x48] sm:$0xff] (!%p1632_p4), %v1408_v30 }
 0x2dc   : > { %v1713_v31 = vpop.f32.mrb[43].mxu0  ;;  %v1386_v12 = vld [vmem:[#allocation2 + $0x50] sm:$0xff] (!%p1632_p4) }
 0x2dd   : > { %1368 = vst [vmem:[#allocation2 + $0x60] sm:$0xff] %v1352_v20  ;;  %v1714_v51 = vadd.f32 %v1713_v31, %v1712_v22  ;;  %v1409_v40 = vadd.f32 (!%p1632_p4), %v1633_v44, %v1386_v12 }
 0x2df   : > { %v1353_v6 = vadd.f32 %v1714_v51, %v1160_v26  ;;  %v1715_v45 = vpop.f32.mrb[44].mxu0  ;;  %1425 = vst [vmem:[#allocation11 + $0x50] sm:$0xff] (!%p1632_p4), %v1409_v40 }
 0x2e0   : > { %v1716_v41 = vpop.f32.mrb[45].mxu0  ;;  %v1387_v14 = vld [vmem:[#allocation2 + $0x58] sm:$0xff] (!%p1632_p4) }
 0x2e1   : > { %1369 = vst [vmem:[#allocation2 + $0x68] sm:$0xff] %v1353_v6  ;;  %v1717_v48 = vadd.f32 %v1716_v41, %v1715_v45  ;;  %v1410_v36 = vadd.f32 (!%p1632_p4), %v1633_v44, %v1387_v14 }
 0x2e3   : > { %v1354_v58 = vadd.f32 %v1717_v48, %v1161_v11  ;;  %v1718_v9 = vpop.f32.mrb[46].mxu0  ;;  %1375 = sbr.rel (%p1632_p4) target bundleno = 756 (0x2f4), region = 72  ;;  %1426 = vst [vmem:[#allocation11 + $0x58] sm:$0xff] (!%p1632_p4), %v1410_v36 }
 0x2e4   : > { %v1719_v47 = vpop.f32.mrb[47].mxu0  ;;  %v1388_v38 = vld [vmem:[#allocation2 + $0x60] sm:$0xff] (!%p1632_p4) }
 0x2e5   : > { %1370 = vst [vmem:[#allocation2 + $0x70] sm:$0xff] %v1354_v58  ;;  %v1720_v53 = vadd.f32 %v1719_v47, %v1718_v9  ;;  %v1411_v16 = vadd.f32 (!%p1632_p4), %v1633_v44, %v1388_v38 }
 0x2e7   : > { %v1355_v63 = vadd.f32 %v1720_v53, %v1162_v19  ;;  %1427 = vst [vmem:[#allocation11 + $0x60] sm:$0xff] (!%p1632_p4), %v1411_v16 }
 0x2e8   : > { %v1389_v28 = vld [vmem:[#allocation2 + $0x68] sm:$0xff] (!%p1632_p4) }
 0x2e9   : > { %1371 = vst [vmem:[#allocation2 + $0x78] sm:$0xff] %v1355_v63  ;;  %v1412_v37 = vadd.f32 (!%p1632_p4), %v1633_v44, %v1389_v28 }
 0x2eb   : > { %1428 = vst [vmem:[#allocation11 + $0x68] sm:$0xff] %v1412_v37 }
 0x2ec   : > { %v1390_v35 = vld [vmem:[#allocation2 + $0x70] sm:$0xff] }
 0x2ed   : > { %v1413_v43 = vadd.f32 %v1633_v44, %v1390_v35 }
 0x2ef   : > { %1429 = vst [vmem:[#allocation11 + $0x70] sm:$0xff] %v1413_v43 }
 0x2f0   : > { %v1391_v56 = vld [vmem:[#allocation2 + $0x78] sm:$0xff] }
 0x2f1   : > { %v1414_v46 = vadd.f32 %v1633_v44, %v1391_v56 }
 0x2f3   : > { %1430 = vst [vmem:[#allocation11 + $0x78] sm:$0xff] %v1414_v46 }
 0x2f4 PF: > { %p1864_p2 = scmp.eq.s32.totalorder %s2420_s16, 1  ;;  %s2272_s27 = smov [#allocation11]  }
 0x2f5   : > { %s1440_s23 = sshll.u32 %s2272_s27, 4  ;;  %s1441_s23 = int_to_ptr.vmem [resolvable:$true] %s1440_s23 }
 0x2f6   : > { %s2171_s24 = scalar_lea.vmem %s1441_s23, 2048  ;;  %p2178_p9 = scmp.lt.s32.totalorder %s1441_s23, %s1441_s23 }
 0x2f7   : > { %p2172_p8 = scmp.ne.s32.totalorder %s1441_s23, %s2171_s24  ;;  %p2179_p12 = scmp.lt.s32.totalorder %s2171_s24, %s2171_s24 }
 0x2f9   : > { %p2173_p3 = pnand %p2172_p8, %p1864_p2  ;;  %p2180_p10 = por %p2179_p12, %p2178_p9 }
 0x2fb   : > { %p2174_p7 = pneg %p2173_p3 }
 0x2fd   : > { %p2181_p6 = pnand %p2180_p10, %p2174_p7 }
 0x2ff   : > { %2184 = shalt.err (!%p2181_p6)
}
 0x300   : > { %s3105_s17 = sld [smem:[#allocation20_spill]] }
 0x306   : > { %s2185_s1 = scalar_lea.hbm %s3105_s17, 2048 }
 0x307   : > { %p2186_p11 = scmp.ne.s32.totalorder %s3105_s17, %s2185_s1  ;;  %p2191_p13 = scmp.lt.u32.totalorder %s2185_s1, %s3105_s17 }
 0x309   : > { %p2187_p5 = pnand %p2186_p11, %p1864_p2 }
 0x30b   : > { %p2188_p0 = pneg %p2187_p5 }
 0x30d   : > { %p2193_p1 = pnand %p2191_p13, %p2188_p0 }
 0x30f   : > { %2196 = shalt.err (!%p2193_p1)
}
 0x310   : > { %s2273_s8 = smov 128   ;;  %s2274_s29 = smov 8  }
 0x311   : > { %1844 = dma.vmem_to_hbm [thread:$0]  (%p1864_p2), %s1441_s23, 2048, %s3105_s17, [#allocation5], %s2273_s8, %s2273_s8, %s2274_s29  }
 0x312   : > { %2234 = dma.done.wait (%p1864_p2), [#allocation5], 2048  }
 0x313   : > { %2236 = vsyncadd (%p1864_p2), [#allocation5], 4294965248 }
 0x314 PF: > { %s3106_s11 = sld [smem:[#allocation16_spill]]  ;;  %s3107_s19 = sld [smem:[#allocation18_spill]] }
 0x315   : > { %s3108_s12 = sld [smem:[#allocation17_spill]]  ;;  %s3109_s24 = smov %s2243_s25 }
 0x316   : > { %s3110_s25 = smov %s2247_s26  ;;  %s3112_s27 = smov %s2255_s28 }
 0x31a   : > { %s25_s29 = sadd.s32 1, %s3106_s11   ;;  %s3111_s26 = smov %s3107_s19 }
 0x31b   : > { %p22_p4 = scmp.ge.s32.totalorder %s25_s29, 4   ;;  %s3113_s28 = smov %s3108_s12 }
 0x31d   :  { %24 = sbr.rel (!%p22_p4) target bundleno = 11 (0xb), region = 130 }
 0x324   :  { %1456 = vsyncpa [#allocation4], 1 }
 0x325   :  { %1458 = vsyncpa [#allocation4 + $0x1], 1 }
 0x326   :  { %1459 = vsyncpa [#allocation7], 1 }
 0x327   :  { %1461 = vsyncpa [#allocation7 + $0x1], 1 }
 0x328   :  { %1462 = vsyncpa [#allocation10], 1 }
 0x329   :  { %1464 = vsyncpa [#allocation10 + $0x1], 1 }
 0x32a   :  { %1465 = vsyncpa [#allocation5], 1 }
 0x32b   :  { %1467 = vsyncpa [#allocation5 + $0x1], 1 }

</bundles_post_ra>
